<compile_context>
chip_gen: v7x
topology: tpu7x:2x2x1
jax: 0.10.0
libtpu: 0.0.40
codegen_flags: <defaults>
</compile_context>

<pallas_src>
import jax
import jax.numpy as jnp
from jax.experimental import pallas as pl
from jax.experimental.pallas import tpu as pltpu

DRUG_NUM = 38
NUM_CLINE = 32             # c_fc expects 288 = 256 + 32  -> 32 cell lines
EMB_DIM = 256              # d_fc expects 294 = 256 + 38  -> graph embedding dim 256
IN_CHANNELS = 3 * EMB_DIM  # 768
H1 = IN_CHANNELS // 2      # 384
H2 = IN_CHANNELS // 4      # 192
H2_PAD = 256               # lane-padded width of fc2 output / the packed output block
BN_EPS = 1e-5

# padded ge scratch layout (f32, sublane-aligned offsets)
GE_ROWS = 128
CLINE_ROW_OFF = 64         # cline features live at scratch rows 64:96

# packed bf16 weight buffer (wA) row offsets -- all multiples of 16 (bf16 sublane tile)
D_EMB_OFF = 0              # d_fc, embedding part   (256 rows)
D_SIM_OFF = 256            # d_fc, similarity part  (38 rows)
D_SIM_END = 294
C_EMB_OFF = 304            # c_fc, embedding part   (256 rows)
C_SIM_OFF = 560            # c_fc, similarity part  (32 rows)
C_SIM_END = 592
W2_OFF = 592               # BN1-folded fc2         (384 rows, 256-wide zero-padded)
WA_ROWS = 976

# packed small-vector buffer (vec, (8,384) f32) row indices
VEC_B1, VEC_B2, VEC_A2, VEC_C2, VEC_W3, VEC_K3, VEC_DB, VEC_CB = range(8)

_VMEM_SPEC = pl.BlockSpec(memory_space=pltpu.MemorySpace.VMEM)


# ---------------------------------------------------------------------------
# The single fused kernel
# ---------------------------------------------------------------------------
def _decoder_fused_kernel(
    ids_ref,                    # (3B, 1) int32, row-adjusted indices
    demb_ref, cemb_ref,         # (38,256) / (32,256) bf16 graph embeddings
    dsim_ref, csim_ref,         # (38,38) / (32,32) f32 similarity matrices
    wA_ref,                     # (976,256) bf16: d_fc / c_fc blocks + folded fc2
    w1_ref,                     # (768,384) bf16: fc1
    vec_ref,                    # (8,384) f32: biases / BN2 / folded fc3
    out_ref,                    # (B,256) f32 packed output
    ge_scratch,                 # (128,256) f32 VMEM scratch: padded node features
):
    f32 = jnp.float32
    bf16 = jnp.bfloat16
    b3 = ids_ref.shape[0]
    b = b3 // 3

    d_b = vec_ref[VEC_DB:VEC_DB + 1, :EMB_DIM]
    c_b = vec_ref[VEC_CB:VEC_CB + 1, :EMB_DIM]

    # ---- node feature projections (d_fc / c_fc), bf16 MXU, f32 accumulation ----
    drug_fea = (
        jnp.dot(demb_ref[...], wA_ref[D_EMB_OFF:D_EMB_OFF + EMB_DIM, :],
                preferred_element_type=f32)
        + jnp.dot(dsim_ref[...].astype(bf16), wA_ref[D_SIM_OFF:D_SIM_END, :],
                  preferred_element_type=f32)
        + d_b)                                                   # (38, 256)
    cline_fea = (
        jnp.dot(cemb_ref[...], wA_ref[C_EMB_OFF:C_EMB_OFF + EMB_DIM, :],
                preferred_element_type=f32)
        + jnp.dot(csim_ref[...].astype(bf16), wA_ref[C_SIM_OFF:C_SIM_END, :],
                  preferred_element_type=f32)
        + c_b)                                                   # (32, 256)

    # ---- zero-padded ge buffer: drug rows 0:38, cline rows 64:96 (aligned) ----
    ge_scratch[...] = jnp.zeros_like(ge_scratch)
    ge_scratch[0:DRUG_NUM, :] = drug_fea
    ge_scratch[CLINE_ROW_OFF:CLINE_ROW_OFF + NUM_CLINE, :] = cline_fea

    # ---- single one-hot gather: (3B,128) @ (128,256) -> [ge_a; ge_b; ge_c] ----
    onehot = (ids_ref[...] ==
              jax.lax.broadcasted_iota(jnp.int32, (b3, GE_ROWS), 1)).astype(f32)
    ge_abc = jnp.dot(onehot, ge_scratch[...], preferred_element_type=f32)  # (3B,256)

    # emb_loss = 0.001 * 0.5 * sum(ge_abc^2) / B   (one fused reduce)
    loss = (0.001 * 0.5 / b) * jnp.sum(ge_abc * ge_abc, keepdims=True)     # (1,1)

    ge_a, ge_b, ge_c = jnp.split(ge_abc, 3, axis=0)              # each (B,256)

    # ---- fc1 as three K=256-aligned bf16 dots (h0 never materialized) + tanh ----
    t1 = jnp.tanh(
        jnp.dot(ge_a.astype(bf16), w1_ref[0:EMB_DIM, :], preferred_element_type=f32)
        + jnp.dot(ge_b.astype(bf16), w1_ref[EMB_DIM:2 * EMB_DIM, :],
                  preferred_element_type=f32)
        + jnp.dot(ge_c.astype(bf16), w1_ref[2 * EMB_DIM:3 * EMB_DIM, :],
                  preferred_element_type=f32)
        + vec_ref[VEC_B1:VEC_B1 + 1, :])                         # (B, 384)

    # ---- fc2 (BN1 folded into weights/bias) + tanh; pad lanes stay exactly 0 ----
    t2 = jnp.tanh(
        jnp.dot(t1.astype(bf16), wA_ref[W2_OFF:W2_OFF + H1, :],
                preferred_element_type=f32)
        + vec_ref[VEC_B2:VEC_B2 + 1, :H2_PAD])                   # (B, 256)

    # ---- BN2 as scale/shift (h is returned) + fc3 folded with BN2 ----
    a2 = vec_ref[VEC_A2:VEC_A2 + 1, :H2_PAD]
    c2 = vec_ref[VEC_C2:VEC_C2 + 1, :H2_PAD]
    w3f = vec_ref[VEC_W3:VEC_W3 + 1, :H2_PAD]                    # a2 * w3 (padded)
    k3 = vec_ref[VEC_K3:VEC_K3 + 1, 0:1]                         # sum(c2*w3) + b3

    h_pad = t2 * a2 + c2                                         # (B,256); cols>=192 are 0
    logits = jnp.sum(t2 * w3f, axis=-1, keepdims=True) + k3      # (B,1)
    probs = jax.nn.sigmoid(logits)

    # ---- pack everything into one lane-dense (B,256) store ----
    lane = jax.lax.broadcasted_iota(jnp.int32, (b, H2_PAD), 1)
    out = jnp.where(lane == H2, probs, h_pad)                    # col 192 = probs
    out = jnp.where(lane == H2 + 1, loss, out)                   # col 193 = emb_loss
    out_ref[...] = out


# ---------------------------------------------------------------------------
# One-time parameter packing: transpose, BN folding, padding, bf16, buffer fusion
# ---------------------------------------------------------------------------
def prepare_params(p):
    f32 = jnp.float32
    bf16 = jnp.bfloat16

    # eval-mode BN as y = x * a + c
    a1 = p["bn1_g"] / jnp.sqrt(p["bn1_v"] + BN_EPS)
    c1 = p["bn1_b"] - p["bn1_m"] * a1
    a2 = p["bn2_g"] / jnp.sqrt(p["bn2_v"] + BN_EPS)
    c2 = p["bn2_b"] - p["bn2_m"] * a2

    d_wt = p["d_fc_w"].T.astype(f32)                  # (294, 256)
    c_wt = p["c_fc_w"].T.astype(f32)                  # (288, 256)
    w1t = p["fc1_w"].T.astype(f32)                    # (768, 384)

    # Fold BN1 (applied after tanh(fc1)) into fc2's input side:
    #   fc2(BN1(t1)) = t1 @ (diag(a1) @ W2.T) + (W2 @ c1 + b2)
    w2f = (p["fc2_w"] * a1[None, :]).T.astype(f32)    # (384, 192)
    b2f = (p["fc2_b"] + p["fc2_w"] @ c1).astype(f32)  # (192,)
    w2p = jnp.pad(w2f, ((0, 0), (0, H2_PAD - H2)))    # (384, 256), zero pad cols

    # One big 256-wide bf16 weight buffer (all row offsets multiples of 16).
    wA = jnp.concatenate([
        d_wt[:EMB_DIM],                               #   0:256  d_fc emb part
        d_wt[EMB_DIM:],                               # 256:294  d_fc sim part
        jnp.zeros((C_EMB_OFF - D_SIM_END, EMB_DIM), f32),  # 294:304 pad
        c_wt[:EMB_DIM],                               # 304:560  c_fc emb part
        c_wt[EMB_DIM:],                               # 560:592  c_fc sim part
        w2p,                                          # 592:976  folded fc2
    ], axis=0).astype(bf16)
    assert wA.shape == (WA_ROWS, EMB_DIM)

    # Fold BN2 into fc3:  h @ w3 + b3 = sum(t2 * (a2*w3)) + (sum(c2*w3) + b3)
    w3 = p["fc3_w"][0].astype(f32)                    # (192,)
    w3f = (a2.astype(f32) * w3)
    k3 = jnp.sum(c2.astype(f32) * w3) + p["fc3_b"][0].astype(f32)

    vec = jnp.zeros((8, H1), f32)
    vec = vec.at[VEC_B1, :].set(p["fc1_b"].astype(f32))
    vec = vec.at[VEC_B2, :H2].set(b2f)
    vec = vec.at[VEC_A2, :H2].set(a2.astype(f32))
    vec = vec.at[VEC_C2, :H2].set(c2.astype(f32))
    vec = vec.at[VEC_W3, :H2].set(w3f)
    vec = vec.at[VEC_K3, 0].set(k3)
    vec = vec.at[VEC_DB, :EMB_DIM].set(p["d_fc_b"].astype(f32))
    vec = vec.at[VEC_CB, :EMB_DIM].set(p["c_fc_b"].astype(f32))

    return {"wA": wA, "w1": w1t.astype(bf16), "vec": vec}


# ---------------------------------------------------------------------------
# Full Decoder.forward (single pallas_call)
# ---------------------------------------------------------------------------
@jax.jit
def decoder_forward(packed, graph_embed, drug_sim_mat, cline_sim_mat,
                    druga_id, drugb_id, cellline_id):
    b = druga_id.shape[0]
    f32 = jnp.float32
    bf16 = jnp.bfloat16

    # pack + adjust indices so cline ids land on the aligned scratch rows (64:96)
    ids = jnp.concatenate([druga_id, drugb_id, cellline_id]).astype(jnp.int32)
    ids = jnp.where(ids < DRUG_NUM, ids, ids + (CLINE_ROW_OFF - DRUG_NUM))
    ids = ids.reshape(3 * b, 1)

    demb = graph_embed[:DRUG_NUM].astype(bf16)        # (38, 256)
    cemb = graph_embed[DRUG_NUM:].astype(bf16)        # (32, 256)

    args = (
        ids, demb, cemb,
        drug_sim_mat.astype(f32), cline_sim_mat.astype(f32),
        packed["wA"], packed["w1"], packed["vec"],
    )
    out = pl.pallas_call(
        _decoder_fused_kernel,
        out_shape=jax.ShapeDtypeStruct((b, H2_PAD), f32),
        in_specs=[_VMEM_SPEC] * len(args),
        out_specs=_VMEM_SPEC,
        scratch_shapes=[pltpu.VMEM((GE_ROWS, EMB_DIM), jnp.float32)],
    )(*args)

    probs = out[:, H2]          # sigmoid(fc3)
    emb_loss = out[0, H2 + 1]   # scalar regularizer
    h = out[:, :H2]             # post-BN2 hidden
    return probs, emb_loss, h


# ---------------------------------------------------------------------------
# Parameter construction (Xavier-uniform weights, zero biases, default BN stats)
# ---------------------------------------------------------------------------
def xavier_uniform(key, out_dim, in_dim):
    bound = (6.0 / (in_dim + out_dim)) ** 0.5
    return jax.random.uniform(key, (out_dim, in_dim), jnp.float32, -bound, bound)


def init_params(key):
    ks = jax.random.split(key, 8)
    return {
        "d_fc_w": xavier_uniform(ks[0], 256, 294), "d_fc_b": jnp.zeros((256,), jnp.float32),
        "c_fc_w": xavier_uniform(ks[1], 256, 288), "c_fc_b": jnp.zeros((256,), jnp.float32),
        "fc1_w": xavier_uniform(ks[2], H1, IN_CHANNELS), "fc1_b": jnp.zeros((H1,), jnp.float32),
        "fc2_w": xavier_uniform(ks[3], H2, H1), "fc2_b": jnp.zeros((H2,), jnp.float32),
        "fc3_w": xavier_uniform(ks[4], 1, H2), "fc3_b": jnp.zeros((1,), jnp.float32),
        "bn1_g": jnp.ones((H1,), jnp.float32), "bn1_b": jnp.zeros((H1,), jnp.float32),
        "bn1_m": jnp.zeros((H1,), jnp.float32), "bn1_v": jnp.ones((H1,), jnp.float32),
        "bn2_g": jnp.ones((H2,), jnp.float32), "bn2_b": jnp.zeros((H2,), jnp.float32),
        "bn2_m": jnp.zeros((H2,), jnp.float32), "bn2_v": jnp.ones((H2,), jnp.float32),
        # att1/att2/trans exist in __init__ but are unused in forward -> omitted.
    }


# ---------------------------------------------------------------------------
# Pure-JAX f32 reference (mirrors the PyTorch eval-mode forward) for validation
# ---------------------------------------------------------------------------
@jax.jit
def reference_forward(params, graph_embed, drug_sim_mat, cline_sim_mat, a, b, c):
    drug_emb, cline_emb = graph_embed[:DRUG_NUM], graph_embed[DRUG_NUM:]
    drug_fea = jnp.concatenate([drug_emb, drug_sim_mat], 1) @ params["d_fc_w"].T + params["d_fc_b"]
    cline_fea = jnp.concatenate([cline_emb, cline_sim_mat], 1) @ params["c_fc_w"].T + params["c_fc_b"]
    ge = jnp.concatenate([drug_fea, cline_fea], 0)
    h0 = jnp.concatenate([ge[a], ge[b], ge[c]], 1)

    def bn(x, g, beta, m, v):
        return (x - m) * g / jnp.sqrt(v + BN_EPS) + beta

    h = jnp.tanh(h0 @ params["fc1_w"].T + params["fc1_b"])
    h = bn(h, params["bn1_g"], params["bn1_b"], params["bn1_m"], params["bn1_v"])
    h = jnp.tanh(h @ params["fc2_w"].T + params["fc2_b"])
    h = bn(h, params["bn2_g"], params["bn2_b"], params["bn2_m"], params["bn2_v"])
    h2 = h @ params["fc3_w"].T + params["fc3_b"]
    loss = 0.001 * 0.5 * (jnp.sum(ge[a] ** 2) + jnp.sum(ge[b] ** 2) + jnp.sum(ge[c] ** 2)) / a.shape[0]
    return jax.nn.sigmoid(h2[:, 0]), loss, h


if __name__ == "__main__":
    key = jax.random.PRNGKey(0)
    k_par, k_ge, k_ds, k_cs, k_a, k_b, k_c = jax.random.split(key, 7)

    params = init_params(k_par)
    packed = prepare_params(params)   # one-time: transpose / BN-fold / pad / bf16 / pack

    batch = 16
    num_nodes = DRUG_NUM + NUM_CLINE                      # 70
    graph_embed = jax.random.normal(k_ge, (num_nodes, EMB_DIM), jnp.float32)
    drug_sim_mat = jax.random.uniform(k_ds, (DRUG_NUM, DRUG_NUM), jnp.float32)
    cline_sim_mat = jax.random.uniform(k_cs, (NUM_CLINE, NUM_CLINE), jnp.float32)
    druga_id = jax.random.randint(k_a, (batch,), 0, DRUG_NUM)
    drugb_id = jax.random.randint(k_b, (batch,), 0, DRUG_NUM)
    cellline_id = jax.random.randint(k_c, (batch,), DRUG_NUM, num_nodes)

    probs, emb_loss, h = decoder_forward(
        packed, graph_embed, drug_sim_mat, cline_sim_mat,
        druga_id, drugb_id, cellline_id
    )
    jax.block_until_ready((probs, emb_loss, h))

    # Shape / sanity checks and comparison against the pure-JAX f32 reference
    # (generous tolerance: matmul operands are bf16 with f32 accumulation).
    p_ref, l_ref, h_ref = reference_forward(
        params, graph_embed, drug_sim_mat, cline_sim_mat, druga_id, drugb_id, cellline_id
    )
    assert probs.shape == (batch,)
    assert emb_loss.shape == ()
    assert h.shape == (batch, H2)
    assert bool(jnp.all(jnp.isfinite(probs)))
    assert bool(jnp.all(jnp.isfinite(h)))
    assert bool(jnp.max(jnp.abs(probs - p_ref)) < 5e-2)
    assert bool(jnp.max(jnp.abs(h - h_ref)) < 5e-2)
    assert bool(jnp.abs(emb_loss - l_ref) < 5e-2 * (1.0 + abs(float(l_ref))))
    print("KERNEL_OK")
</pallas_src>

<mosaic_0001>
module attributes {stable_mosaic.version = 11 : i64} {
  func.func @_decoder_fused_kernel(%arg0: memref<48x1xi32, #tpu.memory_space<vmem>>, %arg1: memref<38x256xbf16, #tpu.memory_space<vmem>>, %arg2: memref<32x256xbf16, #tpu.memory_space<vmem>>, %arg3: memref<38x38xf32, #tpu.memory_space<vmem>>, %arg4: memref<32x32xf32, #tpu.memory_space<vmem>>, %arg5: memref<976x256xbf16, #tpu.memory_space<vmem>>, %arg6: memref<768x384xbf16, #tpu.memory_space<vmem>>, %arg7: memref<8x384xf32, #tpu.memory_space<vmem>>, %arg8: memref<16x256xf32, #tpu.memory_space<vmem>>, %arg9: memref<128x256xf32, #tpu.memory_space<vmem>>) attributes {dimension_semantics = [], scalar_prefetch = 0 : i64, scratch_operands = 1 : i64, tpu.core_type = #tpu.core_type<tc>} {
    %c6 = arith.constant 6 : index
    %c0 = arith.constant 0 : index
    %0 = vector.load %arg7[%c6, %c0] : memref<8x384xf32, #tpu.memory_space<vmem>>, vector<1x256xf32>
    %c7 = arith.constant 7 : index
    %c0_0 = arith.constant 0 : index
    %1 = vector.load %arg7[%c7, %c0_0] : memref<8x384xf32, #tpu.memory_space<vmem>>, vector<1x256xf32>
    %c0_1 = arith.constant 0 : index
    %c0_2 = arith.constant 0 : index
    %2 = vector.load %arg1[%c0_1, %c0_2] : memref<38x256xbf16, #tpu.memory_space<vmem>>, vector<38x256xbf16>
    %c0_3 = arith.constant 0 : index
    %c0_4 = arith.constant 0 : index
    %3 = vector.load %arg5[%c0_3, %c0_4] : memref<976x256xbf16, #tpu.memory_space<vmem>>, vector<256x256xbf16>
    %cst = arith.constant dense<0.000000e+00> : vector<38x256xf32>
    %4 = tpu.matmul %2, %3, %cst {dimension_numbers = #tpu.dot_dimension_numbers<[1], [0], [0], [1], [0, 0, 1, 1], [], []>} : vector<38x256xbf16>, vector<256x256xbf16>, vector<38x256xf32> -> vector<38x256xf32>
    %c0_5 = arith.constant 0 : index
    %c0_6 = arith.constant 0 : index
    %5 = vector.load %arg3[%c0_5, %c0_6] : memref<38x38xf32, #tpu.memory_space<vmem>>, vector<38x38xf32>
    %6 = arith.truncf %5 : vector<38x38xf32> to vector<38x38xbf16>
    %c256 = arith.constant 256 : index
    %c0_7 = arith.constant 0 : index
    %7 = vector.load %arg5[%c256, %c0_7] : memref<976x256xbf16, #tpu.memory_space<vmem>>, vector<38x256xbf16>
    %cst_8 = arith.constant dense<0.000000e+00> : vector<38x256xf32>
    %8 = tpu.matmul %6, %7, %cst_8 {dimension_numbers = #tpu.dot_dimension_numbers<[1], [0], [0], [1], [0, 0, 1, 1], [], []>} : vector<38x38xbf16>, vector<38x256xbf16>, vector<38x256xf32> -> vector<38x256xf32>
    %9 = arith.addf %4, %8 : vector<38x256xf32>
    %10 = vector.broadcast %0 : vector<1x256xf32> to vector<38x256xf32>
    %11 = arith.addf %9, %10 : vector<38x256xf32>
    %c0_9 = arith.constant 0 : index
    %c0_10 = arith.constant 0 : index
    %12 = vector.load %arg2[%c0_9, %c0_10] : memref<32x256xbf16, #tpu.memory_space<vmem>>, vector<32x256xbf16>
    %c304 = arith.constant 304 : index
    %c0_11 = arith.constant 0 : index
    %13 = vector.load %arg5[%c304, %c0_11] : memref<976x256xbf16, #tpu.memory_space<vmem>>, vector<256x256xbf16>
    %cst_12 = arith.constant dense<0.000000e+00> : vector<32x256xf32>
    %14 = tpu.matmul %12, %13, %cst_12 {dimension_numbers = #tpu.dot_dimension_numbers<[1], [0], [0], [1], [0, 0, 1, 1], [], []>} : vector<32x256xbf16>, vector<256x256xbf16>, vector<32x256xf32> -> vector<32x256xf32>
    %c0_13 = arith.constant 0 : index
    %c0_14 = arith.constant 0 : index
    %15 = vector.load %arg4[%c0_13, %c0_14] : memref<32x32xf32, #tpu.memory_space<vmem>>, vector<32x32xf32>
    %16 = arith.truncf %15 : vector<32x32xf32> to vector<32x32xbf16>
    %c560 = arith.constant 560 : index
    %c0_15 = arith.constant 0 : index
    %17 = vector.load %arg5[%c560, %c0_15] : memref<976x256xbf16, #tpu.memory_space<vmem>>, vector<32x256xbf16>
    %cst_16 = arith.constant dense<0.000000e+00> : vector<32x256xf32>
    %18 = tpu.matmul %16, %17, %cst_16 {dimension_numbers = #tpu.dot_dimension_numbers<[1], [0], [0], [1], [0, 0, 1, 1], [], []>} : vector<32x32xbf16>, vector<32x256xbf16>, vector<32x256xf32> -> vector<32x256xf32>
    %19 = arith.addf %14, %18 : vector<32x256xf32>
    %20 = vector.broadcast %1 : vector<1x256xf32> to vector<32x256xf32>
    %21 = arith.addf %19, %20 : vector<32x256xf32>
    %cst_17 = arith.constant 0.000000e+00 : f32
    %22 = vector.broadcast %cst_17 : f32 to vector<128x256xf32>
    %c0_18 = arith.constant 0 : index
    %c0_19 = arith.constant 0 : index
    %23 = vector.load %arg9[%c0_18, %c0_19] : memref<128x256xf32, #tpu.memory_space<vmem>>, vector<128x256xf32>
    tpu.vector_store %arg9[%c0_18, %c0_19], %22 {strides = array<i32>} : memref<128x256xf32, #tpu.memory_space<vmem>>, vector<128x256xf32>,
    %c0_20 = arith.constant 0 : index
    %c0_21 = arith.constant 0 : index
    %24 = vector.load %arg9[%c0_20, %c0_21] : memref<128x256xf32, #tpu.memory_space<vmem>>, vector<38x256xf32>
    tpu.vector_store %arg9[%c0_20, %c0_21], %11 {strides = array<i32>} : memref<128x256xf32, #tpu.memory_space<vmem>>, vector<38x256xf32>,
    %c64 = arith.constant 64 : index
    %c0_22 = arith.constant 0 : index
    %25 = vector.load %arg9[%c64, %c0_22] : memref<128x256xf32, #tpu.memory_space<vmem>>, vector<32x256xf32>
    tpu.vector_store %arg9[%c64, %c0_22], %21 {strides = array<i32>} : memref<128x256xf32, #tpu.memory_space<vmem>>, vector<32x256xf32>,
    %c0_23 = arith.constant 0 : index
    %c0_24 = arith.constant 0 : index
    %26 = vector.load %arg0[%c0_23, %c0_24] : memref<48x1xi32, #tpu.memory_space<vmem>>, vector<48x1xi32>
    %27 = tpu.iota {dimensions = array<i32: 1>} : vector<48x128xi32>
    %28 = vector.broadcast %26 : vector<48x1xi32> to vector<48x128xi32>
    %29 = arith.cmpi eq, %28, %27 : vector<48x128xi32>
    %30 = arith.extui %29 : vector<48x128xi1> to vector<48x128xi32>
    %31 = arith.sitofp %30 : vector<48x128xi32> to vector<48x128xf32>
    %c0_25 = arith.constant 0 : index
    %c0_26 = arith.constant 0 : index
    %32 = vector.load %arg9[%c0_25, %c0_26] : memref<128x256xf32, #tpu.memory_space<vmem>>, vector<128x256xf32>
    %cst_27 = arith.constant dense<0.000000e+00> : vector<48x256xf32>
    %33 = tpu.matmul %31, %32, %cst_27 {dimension_numbers = #tpu.dot_dimension_numbers<[1], [0], [0], [1], [0, 0, 1, 1], [], []>} : vector<48x128xf32>, vector<128x256xf32>, vector<48x256xf32> -> vector<48x256xf32>
    %34 = arith.mulf %33, %33 : vector<48x256xf32>
    %35 = vector.shape_cast %34 : vector<48x256xf32> to vector<1x48x256xf32>
    %cst_28 = arith.constant dense<0.000000e+00> : vector<1xf32>
    %36 = vector.multi_reduction <add>, %35, %cst_28 [1, 2] : vector<1x48x256xf32> to vector<1xf32>
    %37 = vector.shape_cast %36 : vector<1xf32> to vector<1x1x1xf32>
    %38 = vector.extract %37[0, 0, 0] : f32 from vector<1x1x1xf32>
    %39 = vector.broadcast %38 : f32 to vector<1x1xf32>
    %cst_29 = arith.constant 3.125000e-05 : f32
    %40 = vector.broadcast %cst_29 : f32 to vector<1x1xf32>
    %41 = arith.mulf %40, %39 : vector<1x1xf32>
    %42 = vector.extract_strided_slice %33 {offsets = [0, 0], sizes = [16, 256], strides = [1, 1]} : vector<48x256xf32> to vector<16x256xf32>
    %43 = vector.extract_strided_slice %33 {offsets = [16, 0], sizes = [16, 256], strides = [1, 1]} : vector<48x256xf32> to vector<16x256xf32>
    %44 = vector.extract_strided_slice %33 {offsets = [32, 0], sizes = [16, 256], strides = [1, 1]} : vector<48x256xf32> to vector<16x256xf32>
    %45 = arith.truncf %42 : vector<16x256xf32> to vector<16x256xbf16>
    %c0_30 = arith.constant 0 : index
    %c0_31 = arith.constant 0 : index
    %46 = vector.load %arg6[%c0_30, %c0_31] : memref<768x384xbf16, #tpu.memory_space<vmem>>, vector<256x384xbf16>
    %cst_32 = arith.constant dense<0.000000e+00> : vector<16x384xf32>
    %47 = tpu.matmul %45, %46, %cst_32 {dimension_numbers = #tpu.dot_dimension_numbers<[1], [0], [0], [1], [0, 0, 1, 1], [], []>} : vector<16x256xbf16>, vector<256x384xbf16>, vector<16x384xf32> -> vector<16x384xf32>
    %48 = arith.truncf %43 : vector<16x256xf32> to vector<16x256xbf16>
    %c256_33 = arith.constant 256 : index
    %c0_34 = arith.constant 0 : index
    %49 = vector.load %arg6[%c256_33, %c0_34] : memref<768x384xbf16, #tpu.memory_space<vmem>>, vector<256x384xbf16>
    %cst_35 = arith.constant dense<0.000000e+00> : vector<16x384xf32>
    %50 = tpu.matmul %48, %49, %cst_35 {dimension_numbers = #tpu.dot_dimension_numbers<[1], [0], [0], [1], [0, 0, 1, 1], [], []>} : vector<16x256xbf16>, vector<256x384xbf16>, vector<16x384xf32> -> vector<16x384xf32>
    %51 = arith.addf %47, %50 : vector<16x384xf32>
    %52 = arith.truncf %44 : vector<16x256xf32> to vector<16x256xbf16>
    %c512 = arith.constant 512 : index
    %c0_36 = arith.constant 0 : index
    %53 = vector.load %arg6[%c512, %c0_36] : memref<768x384xbf16, #tpu.memory_space<vmem>>, vector<256x384xbf16>
    %cst_37 = arith.constant dense<0.000000e+00> : vector<16x384xf32>
    %54 = tpu.matmul %52, %53, %cst_37 {dimension_numbers = #tpu.dot_dimension_numbers<[1], [0], [0], [1], [0, 0, 1, 1], [], []>} : vector<16x256xbf16>, vector<256x384xbf16>, vector<16x384xf32> -> vector<16x384xf32>
    %55 = arith.addf %51, %54 : vector<16x384xf32>
    %c0_38 = arith.constant 0 : index
    %c0_39 = arith.constant 0 : index
    %56 = vector.load %arg7[%c0_38, %c0_39] : memref<8x384xf32, #tpu.memory_space<vmem>>, vector<1x384xf32>
    %57 = vector.broadcast %56 : vector<1x384xf32> to vector<16x384xf32>
    %58 = arith.addf %55, %57 : vector<16x384xf32>
    %59 = math.tanh %58 : vector<16x384xf32>
    %60 = arith.truncf %59 : vector<16x384xf32> to vector<16x384xbf16>
    %c592 = arith.constant 592 : index
    %c0_40 = arith.constant 0 : index
    %61 = vector.load %arg5[%c592, %c0_40] : memref<976x256xbf16, #tpu.memory_space<vmem>>, vector<384x256xbf16>
    %cst_41 = arith.constant dense<0.000000e+00> : vector<16x256xf32>
    %62 = tpu.matmul %60, %61, %cst_41 {dimension_numbers = #tpu.dot_dimension_numbers<[1], [0], [0], [1], [0, 0, 1, 1], [], []>} : vector<16x384xbf16>, vector<384x256xbf16>, vector<16x256xf32> -> vector<16x256xf32>
    %c1 = arith.constant 1 : index
    %c0_42 = arith.constant 0 : index
    %63 = vector.load %arg7[%c1, %c0_42] : memref<8x384xf32, #tpu.memory_space<vmem>>, vector<1x256xf32>
    %64 = vector.broadcast %63 : vector<1x256xf32> to vector<16x256xf32>
    %65 = arith.addf %62, %64 : vector<16x256xf32>
    %66 = math.tanh %65 : vector<16x256xf32>
    %c2 = arith.constant 2 : index
    %c0_43 = arith.constant 0 : index
    %67 = vector.load %arg7[%c2, %c0_43] : memref<8x384xf32, #tpu.memory_space<vmem>>, vector<1x256xf32>
    %c3 = arith.constant 3 : index
    %c0_44 = arith.constant 0 : index
    %68 = vector.load %arg7[%c3, %c0_44] : memref<8x384xf32, #tpu.memory_space<vmem>>, vector<1x256xf32>
    %c4 = arith.constant 4 : index
    %c0_45 = arith.constant 0 : index
    %69 = vector.load %arg7[%c4, %c0_45] : memref<8x384xf32, #tpu.memory_space<vmem>>, vector<1x256xf32>
    %c5 = arith.constant 5 : index
    %c0_46 = arith.constant 0 : index
    %70 = vector.load %arg7[%c5, %c0_46] : memref<8x384xf32, #tpu.memory_space<vmem>>, vector<1x1xf32>
    %71 = vector.broadcast %67 : vector<1x256xf32> to vector<16x256xf32>
    %72 = arith.mulf %66, %71 : vector<16x256xf32>
    %73 = vector.broadcast %68 : vector<1x256xf32> to vector<16x256xf32>
    %74 = arith.addf %72, %73 : vector<16x256xf32>
    %75 = vector.broadcast %69 : vector<1x256xf32> to vector<16x256xf32>
    %76 = arith.mulf %66, %75 : vector<16x256xf32>
    %cst_47 = arith.constant dense<0.000000e+00> : vector<16xf32>
    %77 = vector.multi_reduction <add>, %76, %cst_47 [1] : vector<16x256xf32> to vector<16xf32>
    %78 = vector.shape_cast %77 : vector<16xf32> to vector<16x1xf32>
    %79 = vector.broadcast %70 : vector<1x1xf32> to vector<16x1xf32>
    %80 = arith.addf %78, %79 : vector<16x1xf32>
    %81 = arith.negf %80 : vector<16x1xf32>
    %82 = math.exp %81 : vector<16x1xf32>
    %cst_48 = arith.constant 1.000000e+00 : f32
    %83 = vector.broadcast %cst_48 : f32 to vector<16x1xf32>
    %84 = arith.addf %83, %82 : vector<16x1xf32>
    %85 = arith.divf %83, %84 : vector<16x1xf32>
    %86 = tpu.iota {dimensions = array<i32: 1>} : vector<16x256xi32>
    %c192_i32 = arith.constant 192 : i32
    %87 = vector.broadcast %c192_i32 : i32 to vector<16x256xi32>
    %88 = arith.cmpi eq, %86, %87 : vector<16x256xi32>
    %89 = vector.shape_cast %85 : vector<16x1xf32> to vector<16x1xf32>
    %90 = vector.broadcast %89 : vector<16x1xf32> to vector<16x256xf32>
    %91 = arith.select %88, %90, %74 : vector<16x256xi1>, vector<16x256xf32>
    %c193_i32 = arith.constant 193 : i32
    %92 = vector.broadcast %c193_i32 : i32 to vector<16x256xi32>
    %93 = arith.cmpi eq, %86, %92 : vector<16x256xi32>
    %94 = vector.shape_cast %41 : vector<1x1xf32> to vector<1x1xf32>
    %95 = vector.broadcast %94 : vector<1x1xf32> to vector<16x256xf32>
    %96 = arith.select %93, %95, %91 : vector<16x256xi1>, vector<16x256xf32>
    %c0_49 = arith.constant 0 : index
    %c0_50 = arith.constant 0 : index
    %97 = vector.load %arg8[%c0_49, %c0_50] : memref<16x256xf32, #tpu.memory_space<vmem>>, vector<16x256xf32>
    tpu.vector_store %arg8[%c0_49, %c0_50], %96 {strides = array<i32>} : memref<16x256xf32, #tpu.memory_space<vmem>>, vector<16x256xf32>,
    return
  }
}

</mosaic_0001>

<bundles_post_ra>
// kernel: decoder_forward.1
= control target key start
LH: loop header
LB: loop body
LE: loop exit
PB: predicated region body
PF: predicated region fallthrough
CT: control target
= control target key end

     0   :  { %13 = vsyncpa [#allocation4], 0  ;;  %s4047_s0 = inlined_call_operand.vmem [shape: s32[48,1], index: 0, kind: input, shape index: {}]   ;;  %s4048_s1 = inlined_call_operand.vmem [shape: bf16[38,256], index: 1, kind: input, shape index: {}]   ;;  %s4049_s2 = inlined_call_operand.vmem [shape: bf16[32,256], index: 2, kind: input, shape index: {}]   ;;  %s4050_s3 = inlined_call_operand.vmem [shape: f32[38,38], index: 3, kind: input, shape index: {}]   ;;  %s4051_s4 = inlined_call_operand.vmem [shape: f32[32,32], index: 4, kind: input, shape index: {}]   ;;  %s4052_s5 = inlined_call_operand.hbm [shape: bf16[976,256], index: 5, kind: input, shape index: {}]   ;;  %s4053_s6 = inlined_call_operand.hbm [shape: bf16[768,384], index: 6, kind: input, shape index: {}]   ;;  %s4054_s7 = inlined_call_operand.vmem [shape: f32[8,384], index: 7, kind: input, shape index: {}]   ;;  %s4055_s8 = inlined_call_operand.vmem [shape: f32[16,256], index: 8, kind: output, shape index: {}]  }
   0x1   :  { %14 = vsyncpa [#allocation6], 0  ;;  %s3784_s27 = smov [#allocation3]   ;;  %s3736_s9 = scalar_lea.hbm %s4052_s5, 15616 }
   0x2   :  { %s30_s28 = sshll.u32 %s3784_s27, 4  ;;  %p3737_p0 = scmp.ne.s32.totalorder %s4052_s5, %s3736_s9  ;;  %s31_s28 = int_to_ptr.vmem [resolvable:$true] %s30_s28 }
   0x3   :  { %p3740_p1 = scmp.lt.u32.totalorder %s3736_s9, %s4052_s5 }
   0x5   :  { %p3742_p2 = pnand %p3740_p1, %p3737_p0 }
   0x7   :  { %3745 = shalt.err (!%p3742_p2)
}
   0x8   :  { %s3746_s14 = scalar_lea.vmem %s31_s28, 15616  ;;  %p3751_p4 = scmp.lt.s32.totalorder %s31_s28, %s31_s28 }
   0x9   :  { %p3747_p3 = scmp.ne.s32.totalorder %s31_s28, %s3746_s14  ;;  %p3752_p5 = scmp.lt.s32.totalorder %s3746_s14, %s3746_s14 }
   0xb   :  { %p3753_p6 = por %p3752_p5, %p3751_p4 }
   0xd   :  { %p3754_p7 = pnand %p3753_p6, %p3747_p3 }
   0xf   :  { %3757 = shalt.err (!%p3754_p7)
}
  0x10   :  { %s3785_s15 = smov 128   ;;  %s3786_s16 = smov 8  }
  0x11   :  { %36 = dma.hbm_to_vmem [thread:$0]  %s4052_s5, 15616, %s31_s28, [#allocation4], %s3785_s15, %s3785_s15, %s3786_s16  }
  0x12   :  { %s3787_s19 = smov [#allocation5]   ;;  %s3758_s23 = scalar_lea.hbm %s4053_s6, 18432 }
  0x13   :  { %s42_s20 = sshll.u32 %s3787_s19, 4  ;;  %p3759_p8 = scmp.ne.s32.totalorder %s4053_s6, %s3758_s23  ;;  %s43_s20 = int_to_ptr.vmem [resolvable:$true] %s42_s20 }
  0x14   :  { %p3762_p9 = scmp.lt.u32.totalorder %s3758_s23, %s4053_s6 }
  0x16   :  { %p3764_p10 = pnand %p3762_p9, %p3759_p8 }
  0x18   :  { %3767 = shalt.err (!%p3764_p10)
}
  0x19   :  { %s3768_s29 = scalar_lea.vmem %s43_s20, 18432  ;;  %p3773_p12 = scmp.lt.s32.totalorder %s43_s20, %s43_s20 }
  0x1a   :  { %p3769_p11 = scmp.ne.s32.totalorder %s43_s20, %s3768_s29  ;;  %p3774_p13 = scmp.lt.s32.totalorder %s3768_s29, %s3768_s29 }
  0x1c   :  { %p3775_p0 = por %p3774_p13, %p3773_p12 }
  0x1e   :  { %p3776_p1 = pnand %p3775_p0, %p3769_p11 }
  0x20   :  { %3779 = shalt.err (!%p3776_p1)
}
  0x21   :  { %s3788_s5 = smov 192   ;;  %s3789_s28 = smov 12  }
  0x22   :  { %48 = dma.hbm_to_vmem [thread:$0]  %s4053_s6, 18432, %s43_s20, [#allocation6], %s3788_s5, %s3788_s5, %s3789_s28  }
  0x23   :  { %3780 = dma.done.wait [#allocation4], 15616  }
  0x24   :  { %3781 = vsyncadd [#allocation4], 4294951680 }
  0x25   :  { %3782 = dma.done.wait [#allocation6], 18432  }
  0x26   :  { %3783 = vsyncadd [#allocation6], 4294948864  ;;  %v3790_v0 = vmov 0   ;;  %v3320_v1 = vld [vmem:[#allocation3 + $0x104] ss:$8 sps:$4 sm:$0xff]   ;;  %vm147_vm0 = vcmask 1042432  }
  0x27   :  { %186 = vmatprep.mubr.bf16.mxu0 %v3790_v0  ;;  %3318 = vset.pattern.permute.xlu0 %v3790_v0  ;;  %v3322_v2 = vld [vmem:[#allocation3 + $0x100] ss:$8 sps:$4 sm:$0xff]   ;;  %v3323_v3 = vld [vmem:[#allocation3 + $0x114] ss:$8 sps:$4 sm:$0xff]   ;;  %v3325_v5 = vld [vmem:[#allocation3 + $0x110] ss:$8 sps:$4 sm:$0xff]  }
  0x28   :  { %3319 = vset.pattern.permute.xlu1 %v3790_v0  ;;  %154 = vmatprep.subr.bf16.mxu0 %v3320_v1  ;;  %v111_v4 = vld [vmem:[#allocation3 + $0x120] sm:$0x77]  ;;  %v100_v9 = vld [vmem:[%s4050_s3 + $0x8] sm:$0xff]  ;;  %vm137_vm1 = vcmask 310272   ;;  %v3333_v14 = vld [vmem:[#allocation3 + $0x14] ss:$8 sps:$4 sm:$0xff]  }
  0x29   :  { %155 = vmatpush1.bf16.msra.mxu0 %v3322_v2  ;;  %v2882_v6 = vcombine.high %v111_v4, %v111_v4  ;;  %v2881_v7 = vcombine.low %v111_v4, %v111_v4  ;;  %v99_v8 = vld [vmem:[%s4050_s3] sm:$0xff]  ;;  %v3346_v15 = vld [vmem:[#allocation3 + $0x134] ss:$8 sps:$4 sm:$0xff]   ;;  %v3348_v16 = vld [vmem:[#allocation3 + $0x130] ss:$8 sps:$4 sm:$0xff]   ;;  %vm550_vm2 = vcmask 261120  }
  0x2a   :  { %156 = vmatprep.subr.bf16.mxu0 %v3323_v3  ;;  %v3330_v11 = vld [vmem:[#allocation3 + $0x4] ss:$8 sps:$4 sm:$0xff]   ;;  %v104_v12 = vpack.c.bf16 %v100_v9, %v99_v8  ;;  %v3328_v13 = vld [vmem:[#allocation3] ss:$8 sps:$4 sm:$0xff]   ;;  %v3331_v17 = vld [vmem:[#allocation3 + $0x10] ss:$8 sps:$4 sm:$0xff]   ;;  %790 = vmatprep.subr.bf16.mxu1 %v3346_v15 }
  0x2b   :  { %v149_v10 = vsel %vm147_vm0, %v2881_v7, 0  ;;  %791 = vmatpush1.bf16.msra.mxu1 %v3348_v16  ;;  %v3352_v18 = vld [vmem:[#allocation3 + $0x144] ss:$8 sps:$4 sm:$0xff]   ;;  %v3354_v19 = vld [vmem:[#allocation3 + $0x140] ss:$8 sps:$4 sm:$0xff]   ;;  %v101_v34 = vld [vmem:[%s4050_s3 + $0x10] sm:$0xff] }
  0x2c   :  { %v3336_v20 = vld [vmem:[#allocation3 + $0x24] ss:$8 sps:$4 sm:$0xff]   ;;  %792 = vmatprep.subr.bf16.mxu1 %v3352_v18  ;;  %v3358_v21 = vld [vmem:[#allocation3 + $0x154] ss:$8 sps:$4 sm:$0xff]   ;;  %v3334_v22 = vld [vmem:[#allocation3 + $0x20] ss:$8 sps:$4 sm:$0xff]  }
  0x2d   :  { %157 = vmatpush1.bf16.msra.mxu0 %v3325_v5  ;;  %v3360_v23 = vld [vmem:[#allocation3 + $0x150] ss:$8 sps:$4 sm:$0xff]   ;;  %v3339_v24 = vld [vmem:[#allocation3 + $0x34] ss:$8 sps:$4 sm:$0xff]   ;;  %v3364_v25 = vld [vmem:[#allocation3 + $0x164] ss:$8 sps:$4 sm:$0xff]  }
  0x2e   :  { %2883 = vmatprep.subr.msk.bf16.mxu0 %vm147_vm0, %v2882_v6  ;;  %v3337_v26 = vld [vmem:[#allocation3 + $0x30] ss:$8 sps:$4 sm:$0xff]   ;;  %v3366_v27 = vld [vmem:[#allocation3 + $0x160] ss:$8 sps:$4 sm:$0xff]   ;;  %v3342_v28 = vld [vmem:[#allocation3 + $0x44] ss:$8 sps:$4 sm:$0xff]  }
  0x2f   :  { %793 = vmatpush1.bf16.msra.mxu1 %v3354_v19  ;;  %v3370_v29 = vld [vmem:[#allocation3 + $0x174] ss:$8 sps:$4 sm:$0xff]   ;;  %v3340_v30 = vld [vmem:[#allocation3 + $0x40] ss:$8 sps:$4 sm:$0xff]   ;;  %v3372_v32 = vld [vmem:[#allocation3 + $0x170] ss:$8 sps:$4 sm:$0xff]  }
  0x30   :  { %794 = vmatprep.subr.bf16.mxu1 %v3358_v21  ;;  %v3345_v31 = vld [vmem:[#allocation3 + $0x54] ss:$8 sps:$4 sm:$0xff]   ;;  %v3376_v33 = vld [vmem:[#allocation3 + $0x184] ss:$8 sps:$4 sm:$0xff]   ;;  %v3343_v37 = vld [vmem:[#allocation3 + $0x50] ss:$8 sps:$4 sm:$0xff]  }
  0x31   :  { %159 = vmatpush1.bf16.msra.mxu0 %v149_v10  ;;  %v102_v35 = vld [vmem:[%s4050_s3 + $0x18] sm:$0xff]  ;;  %v3351_v38 = vld [vmem:[#allocation3 + $0x64] ss:$8 sps:$4 sm:$0xff]   ;;  %v3378_v39 = vld [vmem:[#allocation3 + $0x180] ss:$8 sps:$4 sm:$0xff]  }
  0x32   :  { %402 = vmatprep.subr.bf16.mxu0 %v3330_v11  ;;  %v105_v36 = vpack.c.bf16 %v102_v35, %v101_v34  ;;  %v3382_v40 = vld [vmem:[#allocation3 + $0x194] ss:$8 sps:$4 sm:$0xff]   ;;  %v3349_v41 = vld [vmem:[#allocation3 + $0x60] ss:$8 sps:$4 sm:$0xff]   ;;  %v3384_v43 = vld [vmem:[#allocation3 + $0x190] ss:$8 sps:$4 sm:$0xff]  }
  0x33   :  { %795 = vmatpush1.bf16.msra.mxu1 %v3360_v23  ;;  %v103_v42 = vld [vmem:[%s4050_s3 + $0x20] sm:$0x3f]  ;;  %v3357_v44 = vld [vmem:[#allocation3 + $0x74] ss:$8 sps:$4 sm:$0xff]   ;;  %v3355_v46 = vld [vmem:[#allocation3 + $0x70] ss:$8 sps:$4 sm:$0xff]  }
  0x34   :  { %2884 = vmatmul.mubr.msk.bf16.vlgmr.msra.gmra.mrb[0].mxu0 %vm137_vm1, %v104_v12  ;;  %796 = vmatprep.subr.bf16.mxu1 %v3364_v25  ;;  %v3388_v45 = vld [vmem:[#allocation3 + $0x1a4] ss:$8 sps:$4 sm:$0xff]   ;;  %v106_v47 = vpack.c.bf16 %v103_v42, %v103_v42  ;;  %v3390_v49 = vld [vmem:[#allocation3 + $0x1a0] ss:$8 sps:$4 sm:$0xff]   ;;  %v3394_v50 = vld [vmem:[#allocation3 + $0x1b4] ss:$8 sps:$4 sm:$0xff]  }
  0x35   :  { %403 = vmatpush1.bf16.msra.mxu0 %v3328_v13  ;;  %196 = vmatprep.mubr.bf16.mxu0 %v3790_v0  ;;  %v3363_v48 = vld [vmem:[#allocation3 + $0x84] ss:$8 sps:$4 sm:$0xff]   ;;  %v3361_v52 = vld [vmem:[#allocation3 + $0x80] ss:$8 sps:$4 sm:$0xff]   ;;  %v3396_v53 = vld [vmem:[#allocation3 + $0x1b0] ss:$8 sps:$4 sm:$0xff]  }
  0x36   :  { %404 = vmatprep.subr.bf16.mxu0 %v3333_v14  ;;  %v3410_v51 = vld [vmem:[%s4048_s1 + $0x4] ss:$8 sps:$4 sm:$0xff]   ;;  %v3369_v54 = vld [vmem:[#allocation3 + $0x94] ss:$8 sps:$4 sm:$0xff]   ;;  %v3367_v56 = vld [vmem:[#allocation3 + $0x90] ss:$8 sps:$4 sm:$0xff]  }
  0x37   :  { %797 = vmatpush1.bf16.msra.mxu1 %v3366_v27  ;;  %v3400_v55 = vld [vmem:[#allocation3 + $0x1c4] ss:$8 sps:$4 sm:$0xff]   ;;  %v3402_v57 = vld [vmem:[#allocation3 + $0x1c0] ss:$8 sps:$4 sm:$0xff]   ;;  %v3406_v59 = vld [vmem:[#allocation3 + $0x1d4] ss:$8 sps:$4 sm:$0xff]  }
  0x38   :  { %798 = vmatprep.subr.bf16.mxu1 %v3370_v29  ;;  %v3375_v58 = vld [vmem:[#allocation3 + $0xa4] ss:$8 sps:$4 sm:$0xff]   ;;  %v3373_v60 = vld [vmem:[#allocation3 + $0xa0] ss:$8 sps:$4 sm:$0xff]   ;;  %v3411_v61 = vld [vmem:[#allocation3 + $0x1d0] ss:$8 sps:$4 sm:$0xff]  }
  0x39   :  { %405 = vmatpush1.bf16.msra.mxu0 %v3331_v17  ;;  %v3381_v62 = vld [vmem:[#allocation3 + $0xb4] ss:$8 sps:$4 sm:$0xff]   ;;  %v3415_v63 = vld [vmem:[#allocation3 + $0x1e4] ss:$8 sps:$4 sm:$0xff]   ;;  %v3379_v1 = vld [vmem:[#allocation3 + $0xb0] ss:$8 sps:$4 sm:$0xff]  }
  0x3a   :  { %406 = vmatprep.subr.bf16.mxu0 %v3336_v20  ;;  %v3440_v2 = vld [vmem:[%s4049_s2 + $0x4] ss:$8 sps:$4 sm:$0xff]   ;;  %v3417_v3 = vld [vmem:[#allocation3 + $0x1e0] ss:$8 sps:$4 sm:$0xff]   ;;  %v3418_v5 = vld [vmem:[#allocation3 + $0x1f4] ss:$8 sps:$4 sm:$0xff]  }
  0x3b   :  { %799 = vmatpush1.bf16.msra.mxu1 %v3372_v32  ;;  %v3387_v4 = vld [vmem:[#allocation3 + $0xc4] ss:$8 sps:$4 sm:$0xff]   ;;  %v3385_v6 = vld [vmem:[#allocation3 + $0xc0] ss:$8 sps:$4 sm:$0xff]   ;;  %v3422_v7 = vld [vmem:[#allocation3 + $0x1f0] ss:$8 sps:$4 sm:$0xff]   ;;  %822 = vmatprep.mubr.bf16.mxu1 %v3440_v2 }
  0x3c   :  { %800 = vmatprep.subr.bf16.mxu1 %v3376_v33  ;;  %2885 = vmatmul.mubr.msk.bf16.gmra.mrb[4].mxu0 %vm137_vm1, %v105_v36  ;;  %v912_v8 = vld [vmem:[%s4047_s0] sm:$0xff]  ;;  %v914_v9 = vld [vmem:[%s4047_s0 + $0x10] sm:$0xff]  ;;  %v913_v12 = vld [vmem:[%s4047_s0 + $0x8] sm:$0xff] }
  0x3d   :  { %407 = vmatpush1.bf16.msra.mxu0 %v3334_v22  ;;  %206 = vmatprep.mubr.bf16.mxu0 %v3790_v0  ;;  %v3393_v10 = vld [vmem:[#allocation3 + $0xd4] ss:$8 sps:$4 sm:$0xff]   ;;  %v3424_v11 = vld [vmem:[#allocation3 + $0x204] ss:$8 sps:$4 sm:$0xff]   ;;  %v3391_v14 = vld [vmem:[#allocation3 + $0xd0] ss:$8 sps:$4 sm:$0xff]  }
  0x3e   :  { %408 = vmatprep.subr.bf16.mxu0 %v3339_v24  ;;  %921 = vperm.xlu0 %3318, %v912_v8   ;;  %v915_v13 = vld [vmem:[%s4047_s0 + $0x18] sm:$0xff]  ;;  %v3426_v15 = vld [vmem:[#allocation3 + $0x200] ss:$8 sps:$4 sm:$0xff]   ;;  %v3399_v18 = vld [vmem:[#allocation3 + $0xe4] ss:$8 sps:$4 sm:$0xff]   ;;  %v464_v8 = vlaneseq }
  0x3f   :  { %801 = vmatpush1.bf16.msra.mxu1 %v3378_v39  ;;  %927 = vperm.xlu1 %3319, %v914_v9   ;;  %v916_v16 = vld [vmem:[%s4047_s0 + $0x20] sm:$0xff]  ;;  %v917_v17 = vld [vmem:[%s4047_s0 + $0x28] sm:$0xff]  ;;  %v3430_v19 = vld [vmem:[#allocation3 + $0x214] ss:$8 sps:$4 sm:$0xff]  }
  0x40   :  { %802 = vmatprep.subr.bf16.mxu1 %v3382_v40  ;;  %v3397_v20 = vld [vmem:[#allocation3 + $0xe0] ss:$8 sps:$4 sm:$0xff]   ;;  %v3433_v21 = vld [vmem:[#allocation3 + $0x210] ss:$8 sps:$4 sm:$0xff]   ;;  %v3405_v22 = vld [vmem:[#allocation3 + $0xf4] ss:$8 sps:$4 sm:$0xff]  }
  0x41   :  { %409 = vmatpush1.bf16.msra.mxu0 %v3337_v26  ;;  %v3435_v23 = vld [vmem:[#allocation3 + $0x224] ss:$8 sps:$4 sm:$0xff]   ;;  %v3403_v24 = vld [vmem:[#allocation3 + $0xf0] ss:$8 sps:$4 sm:$0xff]   ;;  %v3437_v25 = vld [vmem:[#allocation3 + $0x220] ss:$8 sps:$4 sm:$0xff]  }
  0x42   :  { %410 = vmatprep.subr.bf16.mxu0 %v3342_v28  ;;  %924 = vperm.xlu0 %3318, %v913_v12   ;;  %v3414_v26 = vld [vmem:[#allocation3 + $0x234] ss:$8 sps:$4 sm:$0xff]   ;;  %v3408_v27 = vld [vmem:[%s4048_s1] ss:$8 sps:$4 sm:$0xff]   ;;  %v3412_v29 = vld [vmem:[#allocation3 + $0x230] ss:$8 sps:$4 sm:$0xff]  }
  0x43   :  { %803 = vmatpush1.bf16.msra.mxu1 %v3384_v43  ;;  %930 = vperm.xlu1 %3319, %v915_v13   ;;  %v3438_v28 = vld [vmem:[%s4049_s2] ss:$8 sps:$4 sm:$0xff]   ;;  %v3441_v32 = vld [vmem:[%s4049_s2 + $0x14] ss:$8 sps:$4 sm:$0xff]   ;;  %v3423_v35 = vld [vmem:[%s4048_s1 + $0x10] ss:$8 sps:$4 sm:$0xff]  }
  0x44   :  { %804 = vmatprep.subr.bf16.mxu1 %v3388_v45  ;;  %2886 = vmatmul.mubr.msk.bf16.gmra.mrb[8].mxu0 %vm137_vm1, %v106_v47  ;;  %v3427_v33 = vld [vmem:[#allocation3 + $0x240] ss:$8 sps:$4 sm:$0xff]   ;;  %v3443_v36 = vld [vmem:[%s4049_s2 + $0x10] ss:$8 sps:$4 sm:$0xff]   ;;  %v3791_v45 = vmov 0.0  }
  0x45   :  { %411 = vmatpush1.bf16.msra.mxu0 %v3340_v30  ;;  %434 = vmatprep.mubr.bf16.mxu0 %v3410_v51  ;;  %v3420_v30 = vld [vmem:[%s4048_s1 + $0x14] ss:$8 sps:$4 sm:$0xff]   ;;  %v66_v34 = vld [vmem:[%s4048_s1 + $0x20] sm:$0x77]  ;;  %v521_v40 = vld [vmem:[%s4051_s4 + $0x8] sm:$0xff]  ;;  %870 = vst [vmem:[#allocation2 + $0x40] sm:$0xff] %v3791_v45 }
  0x46   :  { %412 = vmatprep.subr.bf16.mxu0 %v3345_v31  ;;  %933 = vperm.xlu0 %3318, %v916_v16   ;;  %v3429_v31 = vld [vmem:[#allocation3 + $0x244] ss:$8 sps:$4 sm:$0xff]   ;;  %v522_v42 = vld [vmem:[%s4051_s4 + $0x10] sm:$0xff]  ;;  %v523_v43 = vld [vmem:[%s4051_s4 + $0x18] sm:$0xff]  ;;  %871 = vst [vmem:[#allocation2 + $0x48] sm:$0xff] %v3791_v45 }
  0x47   :  { %805 = vmatpush1.bf16.msra.mxu1 %v3390_v49  ;;  %936 = vperm.xlu1 %3319, %v917_v17   ;;  %v520_v39 = vld [vmem:[%s4051_s4] sm:$0xff]  ;;  %v3447_v49 = vld [vmem:[#allocation5 + $0x198] ss:$12 sps:$4 sm:$0xff]  }
  0x48   :  { %806 = vmatprep.subr.bf16.mxu1 %v3394_v50  ;;  %v3446_v47 = vld [vmem:[#allocation5 + $0x184] ss:$12 sps:$4 sm:$0xff]   ;;  %v3452_v50 = vld [vmem:[#allocation5 + $0x1b4] ss:$12 sps:$4 sm:$0xff]  }
  0x49   :  { %413 = vmatpush1.bf16.msra.mxu0 %v3343_v37  ;;  %v2892_v37 = vcombine.high %v66_v34, %v66_v34  ;;  %v3450_v51 = vld [vmem:[#allocation5 + $0x1b0] ss:$12 sps:$4 sm:$0xff]   ;;  %v3465_v2 = vld [vmem:[#allocation5 + $0x228] ss:$12 sps:$4 sm:$0xff]  }
  0x4a   :  { %414 = vmatprep.subr.bf16.mxu0 %v3351_v38  ;;  %v2891_v38 = vcombine.low %v66_v34, %v66_v34  ;;  %v3478_v9 = vld [vmem:[#allocation5 + $0x270] ss:$12 sps:$4 sm:$0xff]   ;;  %v3483_v12 = vld [vmem:[#allocation5 + $0x288] ss:$12 sps:$4 sm:$0xff]  }
  0x4b   :  { %807 = vmatpush1.bf16.msra.mxu1 %v3396_v53  ;;  %v3453_v53 = vld [vmem:[#allocation5 + $0x1c8] ss:$12 sps:$4 sm:$0xff]  }
  0x4c   :  { %808 = vmatprep.subr.bf16.mxu1 %v3400_v55 }
  0x4d   :  { %415 = vmatpush1.bf16.msra.mxu0 %v3349_v41  ;;  %v524_v41 = vpack.c.bf16 %v521_v40, %v520_v39 }
  0x4e   :  { %416 = vmatprep.subr.bf16.mxu0 %v3357_v44  ;;  %v525_v44 = vpack.c.bf16 %v523_v43, %v522_v42 }
  0x4f   :  { %809 = vmatpush1.bf16.msra.mxu1 %v3402_v57 }
  0x50   :  { %810 = vmatprep.subr.bf16.mxu1 %v3406_v59 }
  0x51   :  { %417 = vmatpush1.bf16.msra.mxu0 %v3355_v46  ;;  %v3444_v46 = vld [vmem:[#allocation5 + $0x180] ss:$12 sps:$4 sm:$0xff]  }
  0x52   :  { %418 = vmatprep.subr.bf16.mxu0 %v3363_v48  ;;  %v3449_v48 = vld [vmem:[#allocation5 + $0x19c] ss:$12 sps:$4 sm:$0xff]  }
  0x53   :  { %811 = vmatpush1.bf16.msra.mxu1 %v3411_v61  ;;  %v3459_v61 = vld [vmem:[#allocation5 + $0x1f8] ss:$12 sps:$4 sm:$0xff]  }
  0x54   :  { %812 = vmatprep.subr.bf16.mxu1 %v3415_v63  ;;  %v3462_v63 = vld [vmem:[#allocation5 + $0x210] ss:$12 sps:$4 sm:$0xff]  }
  0x55   :  { %419 = vmatpush1.bf16.msra.mxu0 %v3361_v52  ;;  %v3455_v52 = vld [vmem:[#allocation5 + $0x1cc] ss:$12 sps:$4 sm:$0xff]  }
  0x56   :  { %420 = vmatprep.subr.bf16.mxu0 %v3369_v54  ;;  %v3458_v54 = vld [vmem:[#allocation5 + $0x1e4] ss:$12 sps:$4 sm:$0xff]  }
  0x57   :  { %813 = vmatpush1.bf16.msra.mxu1 %v3417_v3  ;;  %v3470_v3 = vld [vmem:[#allocation5 + $0x244] ss:$12 sps:$4 sm:$0xff]  }
  0x58   :  { %814 = vmatprep.subr.bf16.mxu1 %v3418_v5  ;;  %v3475_v5 = vld [vmem:[#allocation5 + $0x25c] ss:$12 sps:$4 sm:$0xff]  }
  0x59   :  { %421 = vmatpush1.bf16.msra.mxu0 %v3367_v56  ;;  %v3456_v56 = vld [vmem:[#allocation5 + $0x1e0] ss:$12 sps:$4 sm:$0xff]  }
  0x5a   :  { %422 = vmatprep.subr.bf16.mxu0 %v3375_v58  ;;  %v3461_v58 = vld [vmem:[#allocation5 + $0x1fc] ss:$12 sps:$4 sm:$0xff]  }
  0x5b   :  { %815 = vmatpush1.bf16.msra.mxu1 %v3422_v7  ;;  %v3480_v7 = vld [vmem:[#allocation5 + $0x274] ss:$12 sps:$4 sm:$0xff]  }
  0x5c   :  { %816 = vmatprep.subr.bf16.mxu1 %v3424_v11  ;;  %v3953_v11 = vshrl.u32 %v464_v8, 7 }
  0x5d   :  { %423 = vmatpush1.bf16.msra.mxu0 %v3373_v60 }
  0x5e   :  { %424 = vmatprep.subr.bf16.mxu0 %v3381_v62  ;;  %v3464_v62 = vld [vmem:[#allocation5 + $0x214] ss:$12 sps:$4 sm:$0xff]   ;;  %v3956_v13 = vsub.s32 0, %v3953_v11 }
  0x5f   :  { %817 = vmatpush1.bf16.msra.mxu1 %v3426_v15  ;;  %v3962_v15 = vsub.s32 1, %v3953_v11 }
  0x60   :  { %818 = vmatprep.subr.bf16.mxu1 %v3430_v19 }
  0x61   :  { %425 = vmatpush1.bf16.msra.mxu0 %v3379_v1  ;;  %v3467_v1 = vld [vmem:[#allocation5 + $0x22c] ss:$12 sps:$4 sm:$0xff]  }
  0x62   :  { %426 = vmatprep.subr.bf16.mxu0 %v3387_v4  ;;  %v3468_v4 = vld [vmem:[#allocation5 + $0x240] ss:$12 sps:$4 sm:$0xff]  }
  0x63   :  { %819 = vmatpush1.bf16.msra.mxu1 %v3433_v21 }
  0x64   :  { %820 = vmatprep.subr.bf16.mxu1 %v3435_v23 }
  0x65   :  { %427 = vmatpush1.bf16.msra.mxu0 %v3385_v6  ;;  %v3473_v6 = vld [vmem:[#allocation5 + $0x258] ss:$12 sps:$4 sm:$0xff]  }
  0x66   :  { %428 = vmatprep.subr.bf16.mxu0 %v3393_v10  ;;  %v3485_v10 = vld [vmem:[#allocation5 + $0x28c] ss:$12 sps:$4 sm:$0xff]  }
  0x67   :  { %821 = vmatpush1.bf16.msra.mxu1 %v3437_v25 }
  0x69   :  { %429 = vmatpush1.bf16.msra.mxu0 %v3391_v14  ;;  %v2875_v14 = vld [vmem:[%s4054_s7 + $0x6] ss:$8 sm:$0x3] }
  0x6a   :  { %430 = vmatprep.subr.bf16.mxu0 %v3399_v18  ;;  %823 = vmatmul.mubr.bf16.vlgmr.msra.gmra.mrb[0].mxu1 %v3438_v28  ;;  %v467_v16 = vrot.slane %v2875_v14, %v3956_v13  ;;  %v471_v17 = vrot.slane %v2875_v14, %v3962_v15 }
  0x6b   :  { %832 = vmatprep.mubr.bf16.mxu1 %v3441_v32 }
  0x6d   :  { %431 = vmatpush1.bf16.msra.mxu0 %v3397_v20 }
  0x6e   :  { %432 = vmatprep.subr.bf16.mxu0 %v3405_v22 }
  0x71   :  { %433 = vmatpush1.bf16.msra.mxu0 %v3403_v24 }
  0x72   :  { %557 = vmatprep.subr.bf16.mxu0 %v3414_v26  ;;  %833 = vmatmul.mubr.bf16.gmra.mrb[4].mxu1 %v3443_v36 }
  0x73   :  { %1052 = vmatprep.mubr.f32.mxu1 %v3791_v45 }
  0x74   :  { %435 = vmatmul.mubr.bf16.vlgmr.msra.gmra.mrb[0].mxu0 %v3408_v27 }
  0x75   :  { %558 = vmatpush1.bf16.msra.mxu0 %v3412_v29  ;;  %444 = vmatprep.mubr.bf16.mxu0 %v3420_v30 }
  0x76   :  { %559 = vmatprep.subr.bf16.mxu0 %v3429_v31 }
  0x79   :  { %560 = vmatpush1.bf16.msra.mxu0 %v3427_v33 }
  0x7a   :  { %1511 = vmatprep.subr.bf16.mxu0 %v3446_v47 }
  0x7c   :  { %445 = vmatmul.mubr.bf16.gmra.mrb[4].mxu0 %v3423_v35 }
  0x7d   :  { %454 = vmatprep.mubr.bf16.mxu0 %v2892_v37 }
  0x84   :  { %455 = vmatmul.mubr.bf16.gmra.mrb[12].mxu0 %v2891_v38 }
  0x85   :  { %589 = vmatprep.mubr.bf16.mxu0 %v3790_v0 }
  0x8c   :  { %2929 = vmatmul.mubr.msk.bf16.vlgmr.msra.gmra.mrb[16].mxu0 %vm550_vm2, %v524_v41 }
  0x8d   :  { %599 = vmatprep.mubr.bf16.mxu0 %v3790_v0  ;;  %1512 = vmatpush1.bf16.msra.mxu0 %v3444_v46 }
  0x8e   :  { %1513 = vmatprep.subr.bf16.mxu0 %v3449_v48 }
  0x91   :  { %1514 = vmatpush1.bf16.msra.mxu0 %v3447_v49 }
  0x92   :  { %1515 = vmatprep.subr.bf16.mxu0 %v3452_v50 }
  0x94   :  { %2930 = vmatmul.mubr.msk.bf16.gmra.mrb[20].mxu0 %vm550_vm2, %v525_v44 }
  0x95   :  { %1516 = vmatpush1.bf16.msra.mxu0 %v3450_v51 }
  0x96   :  { %1517 = vmatprep.subr.bf16.mxu0 %v3455_v52 }
  0x99   :  { %1518 = vmatpush1.bf16.msra.mxu0 %v3453_v53 }
  0x9a   :  { %1519 = vmatprep.subr.bf16.mxu0 %v3458_v54 }
  0x9d   :  { %1520 = vmatpush1.bf16.msra.mxu0 %v3456_v56  ;;  %v2876_v56 = vld [vmem:[%s4054_s7 + $0x7] ss:$8 sm:$0x3] }
  0x9e   :  { %1521 = vmatprep.subr.bf16.mxu0 %v3461_v58  ;;  %v847_v58 = vrot.slane %v2876_v56, %v3956_v13 }
  0xa1   :  { %1522 = vmatpush1.bf16.msra.mxu0 %v3459_v61 }
  0xa2   :  { %1523 = vmatprep.subr.bf16.mxu0 %v3464_v62 }
  0xa5   :  { %1524 = vmatpush1.bf16.msra.mxu0 %v3462_v63 }
  0xa6   :  { %1525 = vmatprep.subr.bf16.mxu0 %v3467_v1 }
  0xa9   :  { %1526 = vmatpush1.bf16.msra.mxu0 %v3465_v2 }
  0xaa   :  { %1527 = vmatprep.subr.bf16.mxu0 %v3470_v3 }
  0xad   :  { %1528 = vmatpush1.bf16.msra.mxu0 %v3468_v4 }
  0xae   :  { %1529 = vmatprep.subr.bf16.mxu0 %v3475_v5 }
  0xb1   :  { %1530 = vmatpush1.bf16.msra.mxu0 %v3473_v6 }
  0xb2   :  { %1531 = vmatprep.subr.bf16.mxu0 %v3480_v7 }
  0xb5   :  { %1532 = vmatpush1.bf16.msra.mxu0 %v3478_v9 }
  0xb6   :  { %1533 = vmatprep.subr.bf16.mxu0 %v3485_v10 }
  0xb9   :  { %1534 = vmatpush1.bf16.msra.mxu0 %v3483_v12 }
 0x117   :  { %v3948_v55 = vpop.f32.mrb[8].mxu0 }
 0x118   :  { %v3950_v57 = vpop.f32.mrb[9].mxu0 }
 0x119   :  { %v212_v59 = vpop.f32.mrb[10].mxu0 }
 0x11a   :  { %v213_v60 = vpop.f32.mrb[11].mxu0 }
 0x11b   :  { %v851_v60 = vrot.slane %v2876_v56, %v3962_v15  ;;  %v3497_v56 = vld [vmem:[#allocation5 + $0x200] ss:$12 sps:$4 sm:$0xff]  }
 0x13d   :  { %v824_v19 = vpop.f32.mrb[0].mxu1 }
 0x13e   :  { %v826_v22 = vpop.f32.mrb[1].mxu1 }
 0x13f   :  { %v828_v25 = vpop.f32.mrb[2].mxu1 }
 0x140   :  { %v830_v28 = vpop.f32.mrb[3].mxu1 }
 0x145   :  { %v834_v33 = vpop.f32.mrb[4].mxu1 }
 0x146   :  { %v836_v36 = vpop.f32.mrb[5].mxu1 }
 0x147   :  { %v436_v18 = vpop.f32.mrb[0].mxu0  ;;  %v838_v39 = vpop.f32.mrb[6].mxu1 }
 0x148   :  { %v474_v20 = vadd.f32 %v467_v16, %v436_v18  ;;  %v438_v21 = vpop.f32.mrb[1].mxu0  ;;  %v840_v42 = vpop.f32.mrb[7].mxu1 }
 0x149   :  { %v475_v23 = vadd.f32 %v471_v17, %v438_v21  ;;  %v440_v24 = vpop.f32.mrb[2].mxu0 }
 0x14a   :  { %v476_v26 = vadd.f32 %v467_v16, %v440_v24  ;;  %v442_v27 = vpop.f32.mrb[3].mxu0 }
 0x14b   :  { %v477_v29 = vadd.f32 %v471_v17, %v442_v27 }
 0x14c   :  { %v3245_v30 = vpack.c.bf16 %v476_v26, %v474_v20 }
 0x14d   :  { %v3243_v31 = vpack.c.bf16 %v477_v29, %v475_v23 }
 0x14f   :  { %v446_v32 = vpop.f32.mrb[4].mxu0  ;;  %3244 = vmatprep.subr.bf16.mxu1 %v3243_v31 }
 0x150   :  { %v478_v34 = vadd.f32 %v467_v16, %v446_v32  ;;  %v448_v35 = vpop.f32.mrb[5].mxu0  ;;  %3246 = vmatpush1.bf16.msra.mxu1 %v3245_v30  ;;  %v3976_v32 = vand.u32 127, %v464_v8  ;;  %v3481_v8 = vld [vmem:[#allocation5 + $0x278] ss:$12 sps:$4 sm:$0xff]  }
 0x151   :  { %v479_v37 = vadd.f32 %v471_v17, %v448_v35  ;;  %v450_v38 = vpop.f32.mrb[6].mxu0  ;;  %v3472_v35 = vld [vmem:[#allocation5 + $0x188] ss:$12 sps:$4 sm:$0xff]  }
 0x152   :  { %v480_v40 = vadd.f32 %v467_v16, %v450_v38  ;;  %v452_v41 = vpop.f32.mrb[7].mxu0  ;;  %v3477_v38 = vld [vmem:[#allocation5 + $0x1a0] ss:$12 sps:$4 sm:$0xff]  }
 0x153   :  { %v481_v43 = vadd.f32 %v471_v17, %v452_v41  ;;  %v3482_v41 = vld [vmem:[#allocation5 + $0x1b8] ss:$12 sps:$4 sm:$0xff]  }
 0x154   :  { %v3249_v44 = vpack.c.bf16 %v480_v40, %v478_v34  ;;  %v922_v34 = vpop.permute.xlu0 %921  ;;  %v928_v40 = vpop.permute.xlu1 %927 }
 0x155   :  { %v3247_v46 = vpack.c.bf16 %v481_v43, %v479_v37  ;;  %vm938_vm3 = vcmp.eq.s32.totalorder %v922_v34, %v3976_v32  ;;  %v3793_v37 = vmov 1.0   ;;  %vm940_vm5 = vcmp.eq.s32.totalorder %v928_v40, %v3976_v32  ;;  %v3487_v43 = vld [vmem:[#allocation5 + $0x1d0] ss:$12 sps:$4 sm:$0xff]  }
 0x157   :  { %v456_v47 = vpop.f32.mrb[12].mxu0  ;;  %3248 = vmatprep.subr.bf16.mxu1 %v3247_v46 }
 0x158   :  { %v457_v48 = vadd.f32 %v456_v47, %v3948_v55  ;;  %v458_v49 = vpop.f32.mrb[13].mxu0  ;;  %3250 = vmatpush1.bf16.msra.mxu1 %v3249_v44  ;;  %v931_v44 = vpop.permute.xlu1 %930 }
 0x159   :  { %v459_v50 = vadd.f32 %v458_v49, %v3950_v57  ;;  %v460_v51 = vpop.f32.mrb[14].mxu0  ;;  %vm941_vm6 = vcmp.eq.s32.totalorder %v931_v44, %v3976_v32  ;;  %v3491_v49 = vld [vmem:[#allocation5 + $0x2a8] ss:$12 sps:$4 sm:$0xff]  }
 0x15a   :  { %v482_v52 = vadd.f32 %v467_v16, %v457_v48  ;;  %v461_v53 = vpop.f32.mrb[15].mxu0  ;;  %v3490_v48 = vld [vmem:[#allocation5 + $0x2a4] ss:$12 sps:$4 sm:$0xff]   ;;  %v3492_v51 = vld [vmem:[#allocation5 + $0x1e8] ss:$12 sps:$4 sm:$0xff]  }
 0x15b   :  { %v483_v54 = vadd.f32 %v471_v17, %v459_v50  ;;  %v3488_v50 = vld [vmem:[#allocation5 + $0x2a0] ss:$12 sps:$4 sm:$0xff]   ;;  %1535 = vmatprep.subr.bf16.mxu0 %v3490_v48 }
 0x15c   :  { %902 = vst [vmem:[#allocation2 + $0x40] sm:$0x3f] %v482_v52  ;;  %v937_v47 = vpop.permute.xlu1 %936  ;;  %1536 = vmatpush1.bf16.msra.mxu0 %v3488_v50  ;;  %v3495_v52 = vld [vmem:[#allocation5 + $0x2bc] ss:$12 sps:$4 sm:$0xff]   ;;  %v3496_v53 = vld [vmem:[#allocation5 + $0x2c0] ss:$12 sps:$4 sm:$0xff]  }
 0x15d   :  { %903 = vst [vmem:[#allocation2 + $0x48] sm:$0x3f] %v483_v54  ;;  %vm943_vm8 = vcmp.eq.s32.totalorder %v937_v47, %v3976_v32  ;;  %v3493_v54 = vld [vmem:[#allocation5 + $0x2b8] ss:$12 sps:$4 sm:$0xff]   ;;  %1537 = vmatprep.subr.bf16.mxu0 %v3495_v52  ;;  %v3520_v44 = vld [vmem:[#allocation5 + $0x34] ss:$12 sps:$4 sm:$0xff]  }
 0x15f   :  { %v591_v59 = vpop.f32.mrb[16].mxu0 }
 0x160   :  { %v825_v55 = vadd.f32 %v824_v19, %v591_v59  ;;  %v593_v61 = vpop.f32.mrb[17].mxu0  ;;  %1538 = vmatpush1.bf16.msra.mxu0 %v3493_v54  ;;  %v3498_v59 = vld [vmem:[#allocation5 + $0x2d0] ss:$12 sps:$4 sm:$0xff]  }
 0x161   :  { %v827_v62 = vadd.f32 %v826_v22, %v593_v61  ;;  %v595_v63 = vpop.f32.mrb[18].mxu0  ;;  %v3792_v22 = vmov 0.0|0.0   ;;  %v3506_v61 = vld [vmem:[#allocation5 + $0x2f0] ss:$12 sps:$4 sm:$0xff]  }
 0x162   :  { %v854_v57 = vadd.f32 %v847_v58, %v825_v55  ;;  %v829_v1 = vadd.f32 %v828_v25, %v595_v63  ;;  %v597_v2 = vpop.f32.mrb[19].mxu0  ;;  %v3505_v55 = vld [vmem:[#allocation5 + $0x2ec] ss:$12 sps:$4 sm:$0xff]   ;;  %v3507_v63 = vld [vmem:[#allocation5 + $0x230] ss:$12 sps:$4 sm:$0xff]  }
 0x163   :  { %v855_v3 = vadd.f32 %v851_v60, %v827_v62  ;;  %v831_v4 = vadd.f32 %v830_v28, %v597_v2  ;;  %v964_v5 = vld [vmem:[#allocation2 + $0x40] sm:$0xff] }
 0x164   :  { %v856_v6 = vadd.f32 %v847_v58, %v829_v1  ;;  %v965_v7 = vld [vmem:[#allocation2 + $0x48] sm:$0xff]  ;;  %v3253_v12 = vpack.c.bf16 %v3791_v45, %v964_v5  ;;  %v3503_v62 = vld [vmem:[#allocation5 + $0x2e8] ss:$12 sps:$4 sm:$0xff]  }
 0x165   :  { %v857_v9 = vadd.f32 %v851_v60, %v831_v4  ;;  %v3251_v10 = vpack.c.bf16 %v3791_v45, %v965_v7  ;;  %v3511_v1 = vld [vmem:[#allocation5 + $0xc8] ss:$12 sps:$4 sm:$0xff]   ;;  %v3518_v54 = vld [vmem:[#allocation5 + $0x30] ss:$12 sps:$4 sm:$0xff]  }
 0x166   :  { %v3261_v14 = vpack.c.bf16 %v856_v6, %v854_v57  ;;  %v3510_v57 = vld [vmem:[#allocation5 + $0x4] ss:$12 sps:$4 sm:$0xff]  }
 0x167   :  { %v601_v16 = vpop.f32.mrb[20].mxu0  ;;  %3252 = vmatprep.subr.bf16.mxu1 %v3251_v10  ;;  %v3259_v17 = vpack.c.bf16 %v857_v9, %v855_v3 }
 0x168   :  { %v835_v18 = vadd.f32 %v834_v33, %v601_v16  ;;  %v603_v19 = vpop.f32.mrb[21].mxu0  ;;  %3254 = vmatpush1.bf16.msra.mxu1 %v3253_v12  ;;  %v3471_v33 = vld [vmem:[#allocation5 + $0x248] ss:$12 sps:$4 sm:$0xff]  }
 0x169   :  { %v837_v20 = vadd.f32 %v836_v36, %v603_v19  ;;  %v605_v21 = vpop.f32.mrb[22].mxu0  ;;  %3256 = vmatprep.subr.bf16.mxu1 %v3792_v22  ;;  %v3476_v36 = vld [vmem:[#allocation5 + $0x260] ss:$12 sps:$4 sm:$0xff]  }
 0x16a   :  { %v858_v23 = vadd.f32 %v847_v58, %v835_v18  ;;  %v839_v24 = vadd.f32 %v838_v39, %v605_v21  ;;  %v607_v25 = vpop.f32.mrb[23].mxu0  ;;  %v925_v39 = vpop.permute.xlu0 %924 }
 0x16b   :  { %v859_v26 = vadd.f32 %v851_v60, %v837_v20  ;;  %v841_v27 = vadd.f32 %v840_v42, %v607_v25  ;;  %vm939_vm4 = vcmp.eq.s32.totalorder %v925_v39, %v3976_v32  ;;  %v3486_v42 = vld [vmem:[#allocation5 + $0x290] ss:$12 sps:$4 sm:$0xff]  }
 0x16c   :  { %v860_v28 = vadd.f32 %v847_v58, %v839_v24  ;;  %3258 = vmatpush1.bf16.msra.mxu1 %v3792_v22  ;;  %v3501_v58 = vld [vmem:[#allocation5 + $0x2d8] ss:$12 sps:$4 sm:$0xff]  }
 0x16d   :  { %v861_v29 = vadd.f32 %v851_v60, %v841_v27  ;;  %3260 = vmatprep.subr.bf16.mxu1 %v3259_v17  ;;  %v3502_v60 = vld [vmem:[#allocation5 + $0x218] ss:$12 sps:$4 sm:$0xff]  }
 0x16e   :  { %v3265_v30 = vpack.c.bf16 %v860_v28, %v858_v23  ;;  %v934_v46 = vpop.permute.xlu0 %933 }
 0x16f   :  { %v3263_v31 = vpack.c.bf16 %v861_v29, %v859_v26  ;;  %vm942_vm7 = vcmp.eq.s32.totalorder %v934_v46, %v3976_v32  ;;  %v3521_v46 = vld [vmem:[#allocation5 + $0xf8] ss:$12 sps:$4 sm:$0xff]  }
 0x170   :  { %3262 = vmatpush1.bf16.msra.mxu1 %v3261_v14 }
 0x171   :  { %3264 = vmatprep.subr.bf16.mxu1 %v3263_v31  ;;  %v3508_v31 = vld [vmem:[#allocation5] ss:$12 sps:$4 sm:$0xff]  }
 0x174   :  { %3266 = vmatpush1.bf16.msra.mxu1 %v3265_v30 }
 0x175   :  { %3268 = vmatprep.subr.bf16.mxu1 %v3792_v22 }
 0x178   :  { %3270 = vmatpush1.bf16.msra.mxu1 %v3792_v22 }
 0x179   :  { %3272 = vmatprep.subr.bf16.mxu1 %v3792_v22 }
 0x17c   :  { %3274 = vmatpush1.bf16.msra.mxu1 %v3792_v22 }
 0x17d   :  { %3177 = vmatprep.subr.bf16.mxu1 %v3471_v33  ;;  %v3512_v33 = vld [vmem:[#allocation5 + $0x8] ss:$12 sps:$4 sm:$0xff]  }
 0x17f   :  { %2973 = vmatmul.mubr.msk.f32.vlgmr.msra.gmra.mrb[8].mxu1 %vm938_vm3, %v3793_v37 }
 0x180   :  { %1058 = vmatprep.mubr.f32.mxu1 %v3791_v45  ;;  %3178 = vmatpush3.bf16.msra.mxu1 %v3472_v35 }
 0x181   :  { %3179 = vmatprep.subr.bf16.mxu1 %v3476_v36  ;;  %v3515_v36 = vld [vmem:[#allocation5 + $0x1c] ss:$12 sps:$4 sm:$0xff]  }
 0x183   :  { %2974 = vmatmul.mubr.msk.f32.gmra.mrb[10].mxu1 %vm939_vm4, %v3793_v37 }
 0x184   :  { %1064 = vmatprep.mubr.f32.mxu1 %v3791_v45  ;;  %3180 = vmatpush3.bf16.msra.mxu1 %v3477_v38 }
 0x185   :  { %3181 = vmatprep.subr.bf16.mxu1 %v3481_v8 }
 0x187   :  { %2975 = vmatmul.mubr.msk.f32.gmra.mrb[12].mxu1 %vm940_vm5, %v3793_v37 }
 0x188   :  { %1070 = vmatprep.mubr.f32.mxu1 %v3791_v45  ;;  %3182 = vmatpush3.bf16.msra.mxu1 %v3482_v41  ;;  %v3513_v41 = vld [vmem:[#allocation5 + $0x18] ss:$12 sps:$4 sm:$0xff]  }
 0x189   :  { %3183 = vmatprep.subr.bf16.mxu1 %v3486_v42  ;;  %v3517_v42 = vld [vmem:[#allocation5 + $0x20] ss:$12 sps:$4 sm:$0xff]  }
 0x18b   :  { %2976 = vmatmul.mubr.msk.f32.gmra.mrb[14].mxu1 %vm941_vm6, %v3793_v37 }
 0x18c   :  { %1076 = vmatprep.mubr.f32.mxu1 %v3791_v45  ;;  %3184 = vmatpush3.bf16.msra.mxu1 %v3487_v43 }
 0x18d   :  { %3185 = vmatprep.subr.bf16.mxu1 %v3491_v49 }
 0x18f   :  { %2977 = vmatmul.mubr.msk.f32.gmra.mrb[16].mxu1 %vm942_vm7, %v3793_v37 }
 0x190   :  { %1082 = vmatprep.mubr.f32.mxu1 %v3791_v45  ;;  %3186 = vmatpush3.bf16.msra.mxu1 %v3492_v51  ;;  %v3500_v45 = vld [vmem:[#allocation5 + $0x2d4] ss:$12 sps:$4 sm:$0xff]  }
 0x191   :  { %3187 = vmatprep.subr.bf16.mxu1 %v3496_v53  ;;  %1539 = vmatprep.subr.bf16.mxu0 %v3500_v45  ;;  %v3525_v45 = vld [vmem:[#allocation5 + $0x4c] ss:$12 sps:$4 sm:$0xff]  }
 0x192   :  { %1540 = vmatpush1.bf16.msra.mxu0 %v3498_v59 }
 0x193   :  { %2978 = vmatmul.mubr.msk.f32.gmra.mrb[18].mxu1 %vm943_vm8, %v3793_v37  ;;  %1541 = vmatprep.subr.bf16.mxu0 %v3505_v55  ;;  %v3516_v37 = vld [vmem:[#allocation5 + $0xe0] ss:$12 sps:$4 sm:$0xff]   ;;  %v3523_v55 = vld [vmem:[#allocation5 + $0x48] ss:$12 sps:$4 sm:$0xff]  }
 0x194   :  { %3188 = vmatpush3.bf16.msra.mxu1 %v3497_v56  ;;  %v3522_v56 = vld [vmem:[#allocation5 + $0x38] ss:$12 sps:$4 sm:$0xff]  }
 0x195   :  { %3189 = vmatprep.subr.bf16.mxu1 %v3501_v58  ;;  %v3526_v58 = vld [vmem:[#allocation5 + $0x110] ss:$12 sps:$4 sm:$0xff]  }
 0x196   :  { %1542 = vmatpush1.bf16.msra.mxu0 %v3503_v62  ;;  %v3530_v62 = vld [vmem:[#allocation5 + $0x64] ss:$12 sps:$4 sm:$0xff]  }
 0x197   :  { %1851 = vmatprep.subr.bf16.mxu0 %v3510_v57  ;;  %v3528_v57 = vld [vmem:[#allocation5 + $0x60] ss:$12 sps:$4 sm:$0xff]  }
 0x198   :  { %3190 = vmatpush3.bf16.msra.mxu1 %v3502_v60 }
 0x199   :  { %3191 = vmatprep.subr.bf16.mxu1 %v3506_v61  ;;  %v3527_v61 = vld [vmem:[#allocation5 + $0x50] ss:$12 sps:$4 sm:$0xff]  }
 0x19c   :  { %3192 = vmatpush3.bf16.msra.mxu1 %v3507_v63  ;;  %v3531_v63 = vld [vmem:[#allocation5 + $0x128] ss:$12 sps:$4 sm:$0xff]  }
 0x19d   :  { %3199 = vmatprep.subr.bf16.mxu1 %v3511_v1  ;;  %v3532_v1 = vld [vmem:[#allocation5 + $0x68] ss:$12 sps:$4 sm:$0xff]  }
 0x252   :  { %v1054_v2 = vpop.f32.mrb[8].mxu1 }
 0x253   :  { %v1089_v3 = vmul.f32 %v1054_v2, %v1054_v2  ;;  %v1056_v4 = vpop.f32.mrb[9].mxu1 }
 0x254   :  { %v1090_v5 = vmul.f32 %v1056_v4, %v1056_v4 }
 0x256   :  { %v1101_v6 = vadd.f32 %v1090_v5, %v1089_v3  ;;  %v1060_v7 = vpop.f32.mrb[10].mxu1  ;;  %v3536_v3 = vld [vmem:[#allocation5 + $0x140] ss:$12 sps:$4 sm:$0xff]  }
 0x257   :  { %v1091_v9 = vmul.f32 %v1060_v7, %v1060_v7  ;;  %v3989_v10 = vpack.c.bf16 %v1060_v7, %v1054_v2  ;;  %v1062_v12 = vpop.f32.mrb[11].mxu1  ;;  %v3535_v2 = vld [vmem:[#allocation5 + $0x7c] ss:$12 sps:$4 sm:$0xff]   ;;  %v3537_v5 = vld [vmem:[#allocation5 + $0x80] ss:$12 sps:$4 sm:$0xff]  }
 0x258   :  { %v1092_v14 = vmul.f32 %v1062_v12, %v1062_v12  ;;  %v1124_v16 = vpack.c.bf16 %v1062_v12, %v1056_v4  ;;  %v3533_v4 = vld [vmem:[#allocation5 + $0x78] ss:$12 sps:$4 sm:$0xff]  }
 0x259   :  { %v1102_v17 = vadd.f32 %v1101_v6, %v1091_v9  ;;  %v3540_v6 = vld [vmem:[#allocation5 + $0x94] ss:$12 sps:$4 sm:$0xff]   ;;  %v3541_v7 = vld [vmem:[#allocation5 + $0x158] ss:$12 sps:$4 sm:$0xff]   ;;  %v3538_v9 = vld [vmem:[#allocation5 + $0x90] ss:$12 sps:$4 sm:$0xff]  }
 0x25a   :  { %v1066_v18 = vpop.f32.mrb[12].mxu1  ;;  %v3542_v12 = vld [vmem:[#allocation5 + $0x98] ss:$12 sps:$4 sm:$0xff]  }
 0x25b   :  { %v1103_v19 = vadd.f32 %v1102_v17, %v1092_v14  ;;  %v1093_v20 = vmul.f32 %v1066_v18, %v1066_v18  ;;  %v1068_v21 = vpop.f32.mrb[13].mxu1  ;;  %v3545_v14 = vld [vmem:[#allocation5 + $0xac] ss:$12 sps:$4 sm:$0xff]   ;;  %v3543_v17 = vld [vmem:[#allocation5 + $0xa8] ss:$12 sps:$4 sm:$0xff]  }
 0x25c   :  { %v1094_v22 = vmul.f32 %v1068_v21, %v1068_v21 }
 0x25d   :  { %v1104_v23 = vadd.f32 %v1103_v19, %v1093_v20  ;;  %v3550_v19 = vld [vmem:[#allocation5 + $0xc4] ss:$12 sps:$4 sm:$0xff]   ;;  %v3551_v20 = vld [vmem:[#allocation5 + $0x3c8] ss:$12 sps:$4 sm:$0xff]  }
 0x25e   :  { %v1072_v24 = vpop.f32.mrb[14].mxu1 }
 0x25f   :  { %v1105_v25 = vadd.f32 %v1104_v23, %v1094_v22  ;;  %v1095_v26 = vmul.f32 %v1072_v24, %v1072_v24  ;;  %v1189_v27 = vpack.c.bf16 %v1072_v24, %v1066_v18  ;;  %v1074_v28 = vpop.f32.mrb[15].mxu1  ;;  %v3547_v18 = vld [vmem:[#allocation5 + $0xb0] ss:$12 sps:$4 sm:$0xff]   ;;  %v3552_v22 = vld [vmem:[#allocation5 + $0x308] ss:$12 sps:$4 sm:$0xff]  }
 0x260   :  { %v1096_v29 = vmul.f32 %v1074_v28, %v1074_v28  ;;  %v1190_v30 = vpack.c.bf16 %v1074_v28, %v1068_v21  ;;  %v3548_v21 = vld [vmem:[#allocation5 + $0xc0] ss:$12 sps:$4 sm:$0xff]   ;;  %v3555_v23 = vld [vmem:[#allocation5 + $0xdc] ss:$12 sps:$4 sm:$0xff]   ;;  %v3561_v28 = vld [vmem:[#allocation5 + $0x3f8] ss:$12 sps:$4 sm:$0xff]  }
 0x261   :  { %v1106_v34 = vadd.f32 %v1105_v25, %v1095_v26  ;;  %v3556_v24 = vld [vmem:[#allocation5 + $0x3e0] ss:$12 sps:$4 sm:$0xff]   ;;  %v3553_v25 = vld [vmem:[#allocation5 + $0xd8] ss:$12 sps:$4 sm:$0xff]  }
 0x262   :  { %v1078_v35 = vpop.f32.mrb[16].mxu1  ;;  %1543 = vmatprep.mubr.bf16.mxu0 %v1190_v30  ;;  %1586 = vmatprep.mubr.bf16.mxu1 %v1190_v30  ;;  %v3557_v26 = vld [vmem:[#allocation5 + $0x320] ss:$12 sps:$4 sm:$0xff]   ;;  %v3562_v30 = vld [vmem:[#allocation5 + $0x338] ss:$12 sps:$4 sm:$0xff]  }
 0x263   :  { %v1107_v38 = vadd.f32 %v1106_v34, %v1096_v29  ;;  %v1097_v39 = vmul.f32 %v1078_v35, %v1078_v35  ;;  %v1080_v8 = vpop.f32.mrb[17].mxu1  ;;  %1544 = vmatmul.mubr.bf16.vlgmr.msra.gmra.mrb[24].mxu0 %v1189_v27  ;;  %1587 = vmatmul.mubr.bf16.vlgmr.msra.gmra.mrb[20].mxu1 %v1189_v27  ;;  %v3560_v27 = vld [vmem:[#allocation5 + $0xf4] ss:$12 sps:$4 sm:$0xff]   ;;  %v3558_v29 = vld [vmem:[#allocation5 + $0xf0] ss:$12 sps:$4 sm:$0xff]  }
 0x264   :  { %v1098_v40 = vmul.f32 %v1080_v8, %v1080_v8  ;;  %1852 = vmatpush1.bf16.msra.mxu0 %v3508_v31  ;;  %3200 = vmatpush3.bf16.msra.mxu1 %v3512_v33  ;;  %v3565_v31 = vld [vmem:[#allocation5 + $0x10c] ss:$12 sps:$4 sm:$0xff]   ;;  %v3566_v33 = vld [vmem:[#allocation5 + $0x410] ss:$12 sps:$4 sm:$0xff]   ;;  %v3563_v34 = vld [vmem:[#allocation5 + $0x108] ss:$12 sps:$4 sm:$0xff]  }
 0x265   :  { %v1108_v43 = vadd.f32 %v1107_v38, %v1097_v39  ;;  %1883 = vmatprep.mubr.bf16.mxu0 %v1124_v16  ;;  %1926 = vmatprep.mubr.bf16.mxu1 %v1124_v16  ;;  %v3546_v16 = vld [vmem:[#allocation5 + $0x170] ss:$12 sps:$4 sm:$0xff]   ;;  %v3568_v38 = vld [vmem:[#allocation5 + $0x120] ss:$12 sps:$4 sm:$0xff]   ;;  %v3572_v39 = vld [vmem:[#allocation5 + $0x368] ss:$12 sps:$4 sm:$0xff]  }
 0x266   :  { %v1084_v47 = vpop.f32.mrb[18].mxu1  ;;  %1853 = vmatprep.subr.bf16.mxu0 %v3515_v36  ;;  %3201 = vmatprep.subr.bf16.mxu1 %v3516_v37  ;;  %v3570_v36 = vld [vmem:[#allocation5 + $0x124] ss:$12 sps:$4 sm:$0xff]   ;;  %v3571_v37 = vld [vmem:[#allocation5 + $0x428] ss:$12 sps:$4 sm:$0xff]  }
 0x267   :  { %v1109_v48 = vadd.f32 %v1108_v43, %v1098_v40  ;;  %v1099_v49 = vmul.f32 %v1084_v47, %v1084_v47  ;;  %v3991_v50 = vpack.c.bf16 %v1084_v47, %v1078_v35  ;;  %v1086_v51 = vpop.f32.mrb[19].mxu1  ;;  %v3567_v35 = vld [vmem:[#allocation5 + $0x350] ss:$12 sps:$4 sm:$0xff]   ;;  %v3576_v40 = vld [vmem:[#allocation5 + $0x440] ss:$12 sps:$4 sm:$0xff]  }
 0x268   :  { %v1100_v52 = vmul.f32 %v1086_v51, %v1086_v51  ;;  %v3993_v53 = vpack.c.bf16 %v1086_v51, %v1080_v8  ;;  %1854 = vmatpush1.bf16.msra.mxu0 %v3513_v41  ;;  %3202 = vmatpush3.bf16.msra.mxu1 %v3517_v42  ;;  %v3575_v8 = vld [vmem:[#allocation5 + $0x13c] ss:$12 sps:$4 sm:$0xff]   ;;  %v3573_v41 = vld [vmem:[#allocation5 + $0x138] ss:$12 sps:$4 sm:$0xff]   ;;  %v3577_v42 = vld [vmem:[#allocation5 + $0x380] ss:$12 sps:$4 sm:$0xff]  }
 0x269   :  { %1855 = vmatprep.subr.bf16.mxu0 %v3520_v44  ;;  %3203 = vmatprep.subr.bf16.mxu1 %v3521_v46  ;;  %v1110_v59 = vadd.f32 %v1109_v48, %v1099_v49  ;;  %v3580_v43 = vld [vmem:[#allocation5 + $0x154] ss:$12 sps:$4 sm:$0xff]   ;;  %v3581_v44 = vld [vmem:[#allocation5 + $0x458] ss:$12 sps:$4 sm:$0xff]   ;;  %v3578_v46 = vld [vmem:[#allocation5 + $0x150] ss:$12 sps:$4 sm:$0xff]  }
 0x26a   :  { %v3582_v47 = vld [vmem:[#allocation5 + $0x398] ss:$12 sps:$4 sm:$0xff]   ;;  %v3586_v49 = vld [vmem:[#allocation5 + $0x470] ss:$12 sps:$4 sm:$0xff]   ;;  %v3583_v51 = vld [vmem:[#allocation5 + $0x168] ss:$12 sps:$4 sm:$0xff]  }
 0x26b   :  { %v3995_v60 = vadd.f32 %v1110_v59, %v1100_v52  ;;  %v3585_v48 = vld [vmem:[#allocation5 + $0x16c] ss:$12 sps:$4 sm:$0xff]   ;;  %v3587_v52 = vld [vmem:[#allocation5 + $0x3b0] ss:$12 sps:$4 sm:$0xff]   ;;  %v3596_v59 = vld [vmem:[#allocation5 + $0x334] ss:$12 sps:$4 sm:$0xff]  }
 0x26c   :  { %1856 = vmatpush1.bf16.msra.mxu0 %v3518_v54  ;;  %3204 = vmatpush3.bf16.msra.mxu1 %v3522_v56  ;;  %v3590_v54 = vld [vmem:[#allocation5 + $0x304] ss:$12 sps:$4 sm:$0xff]   ;;  %v3588_v56 = vld [vmem:[#allocation5 + $0x300] ss:$12 sps:$4 sm:$0xff]  }
 0x26d   :  { %1857 = vmatprep.subr.bf16.mxu0 %v3525_v45  ;;  %3205 = vmatprep.subr.bf16.mxu1 %v3526_v58  ;;  %v3593_v45 = vld [vmem:[#allocation5 + $0x31c] ss:$12 sps:$4 sm:$0xff]   ;;  %v3591_v58 = vld [vmem:[#allocation5 + $0x318] ss:$12 sps:$4 sm:$0xff]  }
 0x270   :  { %1858 = vmatpush1.bf16.msra.mxu0 %v3523_v55  ;;  %3206 = vmatpush3.bf16.msra.mxu1 %v3527_v61  ;;  %v3594_v55 = vld [vmem:[#allocation5 + $0x330] ss:$12 sps:$4 sm:$0xff]   ;;  %v3599_v61 = vld [vmem:[#allocation5 + $0x34c] ss:$12 sps:$4 sm:$0xff]  }
 0x271   :  { %1859 = vmatprep.subr.bf16.mxu0 %v3530_v62  ;;  %3207 = vmatprep.subr.bf16.mxu1 %v3531_v63  ;;  %v3597_v62 = vld [vmem:[#allocation5 + $0x348] ss:$12 sps:$4 sm:$0xff]   ;;  %v3602_v63 = vld [vmem:[#allocation5 + $0x364] ss:$12 sps:$4 sm:$0xff]  }
 0x274   :  { %1860 = vmatpush1.bf16.msra.mxu0 %v3528_v57  ;;  %3208 = vmatpush3.bf16.msra.mxu1 %v3532_v1  ;;  %v3600_v57 = vld [vmem:[#allocation5 + $0x360] ss:$12 sps:$4 sm:$0xff]   ;;  %v3603_v1 = vld [vmem:[#allocation5 + $0x378] ss:$12 sps:$4 sm:$0xff]  }
 0x275   :  { %1861 = vmatprep.subr.bf16.mxu0 %v3535_v2  ;;  %3209 = vmatprep.subr.bf16.mxu1 %v3536_v3  ;;  %v3608_v2 = vld [vmem:[#allocation5 + $0x394] ss:$12 sps:$4 sm:$0xff]   ;;  %v3611_v3 = vld [vmem:[#allocation5 + $0x3ac] ss:$12 sps:$4 sm:$0xff]  }
 0x278   :  { %1862 = vmatpush1.bf16.msra.mxu0 %v3533_v4  ;;  %3210 = vmatpush3.bf16.msra.mxu1 %v3537_v5  ;;  %v3609_v4 = vld [vmem:[#allocation5 + $0x3a8] ss:$12 sps:$4 sm:$0xff]   ;;  %v3614_v5 = vld [vmem:[#allocation5 + $0x3c4] ss:$12 sps:$4 sm:$0xff]  }
 0x279   :  { %1863 = vmatprep.subr.bf16.mxu0 %v3540_v6  ;;  %3211 = vmatprep.subr.bf16.mxu1 %v3541_v7  ;;  %v3612_v6 = vld [vmem:[#allocation5 + $0x3c0] ss:$12 sps:$4 sm:$0xff]   ;;  %v3617_v7 = vld [vmem:[#allocation5 + $0x3dc] ss:$12 sps:$4 sm:$0xff]  }
 0x27c   :  { %1864 = vmatpush1.bf16.msra.mxu0 %v3538_v9  ;;  %3212 = vmatpush3.bf16.msra.mxu1 %v3542_v12  ;;  %v3615_v9 = vld [vmem:[#allocation5 + $0x3d8] ss:$12 sps:$4 sm:$0xff]   ;;  %v3620_v12 = vld [vmem:[#allocation5 + $0x3f4] ss:$12 sps:$4 sm:$0xff]  }
 0x27d   :  { %1865 = vmatprep.subr.bf16.mxu0 %v3545_v14  ;;  %3213 = vmatprep.subr.bf16.mxu1 %v3546_v16  ;;  %v3618_v14 = vld [vmem:[#allocation5 + $0x3f0] ss:$12 sps:$4 sm:$0xff]   ;;  %v3623_v16 = vld [vmem:[#allocation5 + $0x40c] ss:$12 sps:$4 sm:$0xff]  }
 0x280   :  { %1866 = vmatpush1.bf16.msra.mxu0 %v3543_v17  ;;  %3214 = vmatpush3.bf16.msra.mxu1 %v3547_v18  ;;  %v3621_v17 = vld [vmem:[#allocation5 + $0x408] ss:$12 sps:$4 sm:$0xff]   ;;  %v3626_v18 = vld [vmem:[#allocation5 + $0x424] ss:$12 sps:$4 sm:$0xff]  }
 0x281   :  { %1867 = vmatprep.subr.bf16.mxu0 %v3550_v19  ;;  %3221 = vmatprep.subr.bf16.mxu1 %v3551_v20  ;;  %v3624_v19 = vld [vmem:[#allocation5 + $0x420] ss:$12 sps:$4 sm:$0xff]   ;;  %v3629_v20 = vld [vmem:[#allocation5 + $0x43c] ss:$12 sps:$4 sm:$0xff]  }
 0x283   :  { %1927 = vmatmul.mubr.bf16.vlgmr.msra.gmra.mrb[24].mxu1 %v3989_v10 }
 0x284   :  { %1868 = vmatpush1.bf16.msra.mxu0 %v3548_v21  ;;  %3222 = vmatpush3.bf16.msra.mxu1 %v3552_v22  ;;  %v3627_v21 = vld [vmem:[#allocation5 + $0x438] ss:$12 sps:$4 sm:$0xff]   ;;  %v3632_v22 = vld [vmem:[#allocation5 + $0x454] ss:$12 sps:$4 sm:$0xff]  }
 0x285   :  { %2332 = vmatprep.mubr.bf16.mxu1 %v3993_v53  ;;  %1869 = vmatprep.subr.bf16.mxu0 %v3555_v23  ;;  %v3630_v23 = vld [vmem:[#allocation5 + $0x450] ss:$12 sps:$4 sm:$0xff]  }
 0x286   :  { %3223 = vmatprep.subr.bf16.mxu1 %v3556_v24  ;;  %v3635_v24 = vld [vmem:[#allocation5 + $0x46c] ss:$12 sps:$4 sm:$0xff]  }
 0x288   :  { %1870 = vmatpush1.bf16.msra.mxu0 %v3553_v25  ;;  %3224 = vmatpush3.bf16.msra.mxu1 %v3557_v26  ;;  %v3633_v25 = vld [vmem:[#allocation5 + $0x468] ss:$12 sps:$4 sm:$0xff]  }
 0x289   :  { %1871 = vmatprep.subr.bf16.mxu0 %v3560_v27  ;;  %3225 = vmatprep.subr.bf16.mxu1 %v3561_v28  ;;  %v3636_v26 = vld [vmem:[#allocation3 + $0x250] ss:$8 sps:$4 sm:$0xff]   ;;  %v3638_v27 = vld [vmem:[#allocation3 + $0x254] ss:$8 sps:$4 sm:$0xff]   ;;  %v3641_v28 = vld [vmem:[#allocation3 + $0x264] ss:$8 sps:$4 sm:$0xff]  }
 0x28c   :  { %1872 = vmatpush1.bf16.msra.mxu0 %v3558_v29  ;;  %3226 = vmatpush3.bf16.msra.mxu1 %v3562_v30  ;;  %v3639_v29 = vld [vmem:[#allocation3 + $0x260] ss:$8 sps:$4 sm:$0xff]   ;;  %v3644_v30 = vld [vmem:[#allocation3 + $0x274] ss:$8 sps:$4 sm:$0xff]  }
 0x28d   :  { %1873 = vmatprep.subr.bf16.mxu0 %v3565_v31  ;;  %3227 = vmatprep.subr.bf16.mxu1 %v3566_v33  ;;  %v3642_v31 = vld [vmem:[#allocation3 + $0x270] ss:$8 sps:$4 sm:$0xff]   ;;  %v3647_v33 = vld [vmem:[#allocation3 + $0x284] ss:$8 sps:$4 sm:$0xff]  }
 0x290   :  { %1874 = vmatpush1.bf16.msra.mxu0 %v3563_v34  ;;  %3228 = vmatpush3.bf16.msra.mxu1 %v3567_v35  ;;  %v3645_v34 = vld [vmem:[#allocation3 + $0x280] ss:$8 sps:$4 sm:$0xff]   ;;  %v3650_v35 = vld [vmem:[#allocation3 + $0x294] ss:$8 sps:$4 sm:$0xff]  }
 0x291   :  { %1875 = vmatprep.subr.bf16.mxu0 %v3570_v36  ;;  %3229 = vmatprep.subr.bf16.mxu1 %v3571_v37  ;;  %v3648_v36 = vld [vmem:[#allocation3 + $0x290] ss:$8 sps:$4 sm:$0xff]   ;;  %v3651_v37 = vld [vmem:[#allocation3 + $0x2a0] ss:$8 sps:$4 sm:$0xff]  }
 0x294   :  { %1876 = vmatpush1.bf16.msra.mxu0 %v3568_v38  ;;  %3230 = vmatpush3.bf16.msra.mxu1 %v3572_v39  ;;  %v3656_v38 = vld [vmem:[#allocation3 + $0x2b4] ss:$8 sps:$4 sm:$0xff]   ;;  %v3654_v39 = vld [vmem:[#allocation3 + $0x2b0] ss:$8 sps:$4 sm:$0xff]  }
 0x295   :  { %1877 = vmatprep.subr.bf16.mxu0 %v3575_v8  ;;  %3231 = vmatprep.subr.bf16.mxu1 %v3576_v40  ;;  %v3659_v8 = vld [vmem:[#allocation3 + $0x2c4] ss:$8 sps:$4 sm:$0xff]   ;;  %v3657_v40 = vld [vmem:[#allocation3 + $0x2c0] ss:$8 sps:$4 sm:$0xff]  }
 0x298   :  { %1878 = vmatpush1.bf16.msra.mxu0 %v3573_v41  ;;  %3232 = vmatpush3.bf16.msra.mxu1 %v3577_v42  ;;  %v3662_v41 = vld [vmem:[#allocation3 + $0x2d4] ss:$8 sps:$4 sm:$0xff]   ;;  %v3660_v42 = vld [vmem:[#allocation3 + $0x2d0] ss:$8 sps:$4 sm:$0xff]  }
 0x299   :  { %1879 = vmatprep.subr.bf16.mxu0 %v3580_v43  ;;  %3233 = vmatprep.subr.bf16.mxu1 %v3581_v44  ;;  %v3665_v43 = vld [vmem:[#allocation3 + $0x2e4] ss:$8 sps:$4 sm:$0xff]   ;;  %v3663_v44 = vld [vmem:[#allocation3 + $0x2e0] ss:$8 sps:$4 sm:$0xff]  }
 0x29c   :  { %1880 = vmatpush1.bf16.msra.mxu0 %v3578_v46  ;;  %3234 = vmatpush3.bf16.msra.mxu1 %v3582_v47  ;;  %v3668_v46 = vld [vmem:[#allocation3 + $0x2f4] ss:$8 sps:$4 sm:$0xff]   ;;  %v3666_v47 = vld [vmem:[#allocation3 + $0x2f0] ss:$8 sps:$4 sm:$0xff]  }
 0x29d   :  { %1881 = vmatprep.subr.bf16.mxu0 %v3585_v48  ;;  %3235 = vmatprep.subr.bf16.mxu1 %v3586_v49  ;;  %v3671_v48 = vld [vmem:[#allocation3 + $0x304] ss:$8 sps:$4 sm:$0xff]   ;;  %v3669_v49 = vld [vmem:[#allocation3 + $0x300] ss:$8 sps:$4 sm:$0xff]  }
 0x2a0   :  { %1882 = vmatpush1.bf16.msra.mxu0 %v3583_v51  ;;  %3236 = vmatpush3.bf16.msra.mxu1 %v3587_v52 }
 0x2a1   :  { %2257 = vmatprep.subr.bf16.mxu0 %v3590_v54  ;;  %2680 = vmatprep.subr.bf16.mxu1 %v3638_v27 }
 0x2a3   :  { %1884 = vmatmul.mubr.bf16.vlgmr.msra.gmra.mrb[24].mxu0 %v3989_v10  ;;  %2333 = vmatmul.mubr.bf16.vlgmr.msra.gmra.mrb[28].mxu1 %v3991_v50  ;;  %v3605_v10 = vld [vmem:[#allocation5 + $0x37c] ss:$12 sps:$4 sm:$0xff]  }
 0x2a4   :  { %2258 = vmatpush1.bf16.msra.mxu0 %v3588_v56  ;;  %2289 = vmatprep.mubr.bf16.mxu0 %v3993_v53  ;;  %v3606_v53 = vld [vmem:[#allocation5 + $0x390] ss:$12 sps:$4 sm:$0xff]  }
 0x2a5   :  { %2259 = vmatprep.subr.bf16.mxu0 %v3593_v45  ;;  %2681 = vmatpush1.bf16.msra.mxu1 %v3636_v26  ;;  %v3674_v45 = vld [vmem:[#allocation3 + $0x314] ss:$8 sps:$4 sm:$0xff]  }
 0x2a6   :  { %2682 = vmatprep.subr.bf16.mxu1 %v3641_v28 }
 0x2a8   :  { %2260 = vmatpush1.bf16.msra.mxu0 %v3591_v58 }
 0x2a9   :  { %2261 = vmatprep.subr.bf16.mxu0 %v3596_v59  ;;  %2683 = vmatpush1.bf16.msra.mxu1 %v3639_v29  ;;  %v3672_v59 = vld [vmem:[#allocation3 + $0x310] ss:$8 sps:$4 sm:$0xff]  }
 0x2aa   :  { %2684 = vmatprep.subr.bf16.mxu1 %v3644_v30 }
 0x2ac   :  { %2262 = vmatpush1.bf16.msra.mxu0 %v3594_v55 }
 0x2ad   :  { %2263 = vmatprep.subr.bf16.mxu0 %v3599_v61  ;;  %2685 = vmatpush1.bf16.msra.mxu1 %v3642_v31  ;;  %v3675_v61 = vld [vmem:[#allocation3 + $0x320] ss:$8 sps:$4 sm:$0xff]  }
 0x2ae   :  { %2686 = vmatprep.subr.bf16.mxu1 %v3647_v33 }
 0x2b0   :  { %2264 = vmatpush1.bf16.msra.mxu0 %v3597_v62  ;;  %v3677_v62 = vld [vmem:[#allocation3 + $0x324] ss:$8 sps:$4 sm:$0xff]  }
 0x2b1   :  { %2265 = vmatprep.subr.bf16.mxu0 %v3602_v63  ;;  %2687 = vmatpush1.bf16.msra.mxu1 %v3645_v34  ;;  %v3680_v63 = vld [vmem:[#allocation3 + $0x334] ss:$8 sps:$4 sm:$0xff]  }
 0x2b2   :  { %2688 = vmatprep.subr.bf16.mxu1 %v3650_v35 }
 0x2b4   :  { %2266 = vmatpush1.bf16.msra.mxu0 %v3600_v57  ;;  %v3678_v57 = vld [vmem:[#allocation3 + $0x330] ss:$8 sps:$4 sm:$0xff]  }
 0x2b5   :  { %2267 = vmatprep.subr.bf16.mxu0 %v3605_v10  ;;  %2689 = vmatpush1.bf16.msra.mxu1 %v3648_v36  ;;  %v3683_v10 = vld [vmem:[#allocation3 + $0x344] ss:$8 sps:$4 sm:$0xff]  }
 0x2b8   :  { %2268 = vmatpush1.bf16.msra.mxu0 %v3603_v1  ;;  %v3681_v1 = vld [vmem:[#allocation3 + $0x340] ss:$8 sps:$4 sm:$0xff]  }
 0x2b9   :  { %2269 = vmatprep.subr.bf16.mxu0 %v3608_v2  ;;  %v3686_v2 = vld [vmem:[#allocation3 + $0x354] ss:$8 sps:$4 sm:$0xff]  }
 0x2bc   :  { %2270 = vmatpush1.bf16.msra.mxu0 %v3606_v53 }
 0x2bd   :  { %2271 = vmatprep.subr.bf16.mxu0 %v3611_v3 }
 0x2c0   :  { %2272 = vmatpush1.bf16.msra.mxu0 %v3609_v4 }
 0x2c1   :  { %2273 = vmatprep.subr.bf16.mxu0 %v3614_v5 }
 0x2c4   :  { %2274 = vmatpush1.bf16.msra.mxu0 %v3612_v6 }
 0x2c5   :  { %2275 = vmatprep.subr.bf16.mxu0 %v3617_v7 }
 0x2c8   :  { %2276 = vmatpush1.bf16.msra.mxu0 %v3615_v9 }
 0x2c9   :  { %2277 = vmatprep.subr.bf16.mxu0 %v3620_v12 }
 0x2cc   :  { %2278 = vmatpush1.bf16.msra.mxu0 %v3618_v14  ;;  %v2359_v14 = vsub.s32 2, %v3953_v11 }
 0x2cd   :  { %2279 = vmatprep.subr.bf16.mxu0 %v3623_v16  ;;  %v2347_v16 = vld [vmem:[%s4054_s7] ss:$8 sm:$0x7] }
 0x2ce   :  { %v2352_v30 = vrot.slane %v2347_v16, %v3956_v13  ;;  %v2356_v31 = vrot.slane %v2347_v16, %v3962_v15 }
 0x2d0   :  { %2280 = vmatpush1.bf16.msra.mxu0 %v3621_v17 }
 0x2d1   :  { %2281 = vmatprep.subr.bf16.mxu0 %v3626_v18 }
 0x2d4   :  { %2282 = vmatpush1.bf16.msra.mxu0 %v3624_v19 }
 0x2d5   :  { %2283 = vmatprep.subr.bf16.mxu0 %v3629_v20  ;;  %v2360_v20 = vrot.slane %v2347_v16, %v2359_v14  ;;  %v3173_v14 = vld [vmem:[%s4054_s7 + $0x3] ss:$8 sm:$0x3] }
 0x2d8   :  { %2284 = vmatpush1.bf16.msra.mxu0 %v3627_v21 }
 0x2d9   :  { %2285 = vmatprep.subr.bf16.mxu0 %v3632_v22 }
 0x2dc   :  { %2286 = vmatpush1.bf16.msra.mxu0 %v3630_v23 }
 0x2dd   :  { %2287 = vmatprep.subr.bf16.mxu0 %v3635_v24 }
 0x2e0   :  { %2288 = vmatpush1.bf16.msra.mxu0 %v3633_v25 }
 0x2e3   :  { %2290 = vmatmul.mubr.bf16.vlgmr.msra.gmra.mrb[24].mxu0 %v3991_v50  ;;  %v3653_v50 = vld [vmem:[#allocation3 + $0x2a4] ss:$8 sps:$4 sm:$0xff]  }
 0x2e4   :  { %2690 = vmatprep.subr.bf16.mxu1 %v3653_v50 }
 0x2e5   :  { %2691 = vmatpush1.bf16.msra.mxu1 %v3651_v37 }
 0x2e6   :  { %2692 = vmatprep.subr.bf16.mxu1 %v3656_v38 }
 0x2e9   :  { %2693 = vmatpush1.bf16.msra.mxu1 %v3654_v39 }
 0x2ea   :  { %2694 = vmatprep.subr.bf16.mxu1 %v3659_v8 }
 0x2ed   :  { %2695 = vmatpush1.bf16.msra.mxu1 %v3657_v40 }
 0x2ee   :  { %2696 = vmatprep.subr.bf16.mxu1 %v3662_v41 }
 0x2f1   :  { %2697 = vmatpush1.bf16.msra.mxu1 %v3660_v42 }
 0x2f2   :  { %2698 = vmatprep.subr.bf16.mxu1 %v3665_v43 }
 0x2f5   :  { %2699 = vmatpush1.bf16.msra.mxu1 %v3663_v44 }
 0x2f6   :  { %2700 = vmatprep.subr.bf16.mxu1 %v3668_v46  ;;  %v3684_v46 = vld [vmem:[#allocation3 + $0x350] ss:$8 sps:$4 sm:$0xff]  }
 0x2f9   :  { %2701 = vmatpush1.bf16.msra.mxu1 %v3666_v47  ;;  %v3689_v47 = vld [vmem:[#allocation3 + $0x364] ss:$8 sps:$4 sm:$0xff]  }
 0x2fa   :  { %2702 = vmatprep.subr.bf16.mxu1 %v3671_v48  ;;  %v3687_v48 = vld [vmem:[#allocation3 + $0x360] ss:$8 sps:$4 sm:$0xff]  }
 0x2fd   :  { %2703 = vmatpush1.bf16.msra.mxu1 %v3669_v49  ;;  %v3692_v49 = vld [vmem:[#allocation3 + $0x374] ss:$8 sps:$4 sm:$0xff]  }
 0x2fe   :  { %2704 = vmatprep.subr.bf16.mxu1 %v3674_v45  ;;  %v3696_v45 = vld [vmem:[#allocation3 + $0x390] ss:$8 sps:$4 sm:$0xff]  }
 0x301   :  { %2705 = vmatpush1.bf16.msra.mxu1 %v3672_v59  ;;  %v3699_v59 = vld [vmem:[#allocation3 + $0x3a0] ss:$8 sps:$4 sm:$0xff]  }
 0x302   :  { %2706 = vmatprep.subr.bf16.mxu1 %v3677_v62  ;;  %v3705_v62 = vld [vmem:[#allocation3 + $0x3c0] ss:$8 sps:$4 sm:$0xff]  }
 0x305   :  { %2707 = vmatpush1.bf16.msra.mxu1 %v3675_v61  ;;  %v3707_v61 = vld [vmem:[#allocation3 + $0x3c4] ss:$8 sps:$4 sm:$0xff]  }
 0x306   :  { %2708 = vmatprep.subr.bf16.mxu1 %v3680_v63  ;;  %v3123_v63 = vld [vmem:[%s4054_s7 + $0x1] ss:$8 sm:$0x3] }
 0x309   :  { %2709 = vmatpush1.bf16.msra.mxu1 %v3678_v57  ;;  %v2433_v57 = vrot.slane %v3123_v63, %v3956_v13 }
 0x30a   :  { %2710 = vmatprep.subr.bf16.mxu1 %v3683_v10  ;;  %v2437_v10 = vrot.slane %v3123_v63, %v3962_v15 }
 0x30d   :  { %2711 = vmatpush1.bf16.msra.mxu1 %v3681_v1 }
 0x30e   :  { %2723 = vmatprep.subr.bf16.mxu1 %v3686_v2 }
 0x336   :  { %v3193_v51 = vpop.f32.mrb[20].mxu1 }
 0x337   :  { %v3194_v52 = vpop.f32.mrb[21].mxu1 }
 0x338   :  { %v3195_v54 = vadd.f32 %v3194_v52, %v3193_v51  ;;  %v3196_v56 = vpop.f32.mrb[22].mxu1  ;;  %v3690_v51 = vld [vmem:[#allocation3 + $0x370] ss:$8 sps:$4 sm:$0xff]   ;;  %v3695_v52 = vld [vmem:[#allocation3 + $0x384] ss:$8 sps:$4 sm:$0xff]  }
 0x339   :  { %v3197_v58 = vpop.f32.mrb[23].mxu1 }
 0x33a   :  { %v3198_v55 = vadd.f32 %v3197_v58, %v3196_v56  ;;  %v3698_v56 = vld [vmem:[#allocation3 + $0x394] ss:$8 sps:$4 sm:$0xff]   ;;  %v3701_v58 = vld [vmem:[#allocation3 + $0x3a4] ss:$8 sps:$4 sm:$0xff]  }
 0x356   :  { %v3215_v53 = vpop.f32.mrb[24].mxu1 }
 0x357   :  { %v3216_v3 = vpop.f32.mrb[25].mxu1 }
 0x358   :  { %v3217_v4 = vadd.f32 %v3216_v3, %v3215_v53  ;;  %v3218_v5 = vpop.f32.mrb[26].mxu1 }
 0x359   :  { %v3219_v6 = vpop.f32.mrb[27].mxu1 }
 0x35a   :  { %v1929_v7 = vadd.f32 %v3217_v4, %v3195_v54  ;;  %v3220_v9 = vadd.f32 %v3219_v6, %v3218_v5  ;;  %v3693_v54 = vld [vmem:[#allocation3 + $0x380] ss:$8 sps:$4 sm:$0xff]  }
 0x35c   :  { %v1932_v12 = vadd.f32 %v3220_v9, %v3198_v55  ;;  %v3704_v55 = vld [vmem:[#allocation3 + $0x3b4] ss:$8 sps:$4 sm:$0xff]   ;;  %v3174_v9 = vld [vmem:[%s4054_s7 + $0x4] ss:$8 sm:$0x3] }
 0x35d   :  { %v2811_v16 = vrot.slane %v3174_v9, %v3956_v13 }
 0x376   :  { %v3237_v17 = vpop.f32.mrb[28].mxu1 }
 0x377   :  { %v3238_v18 = vpop.f32.mrb[29].mxu1 }
 0x378   :  { %v3239_v19 = vadd.f32 %v3238_v18, %v3237_v17  ;;  %v3240_v21 = vpop.f32.mrb[30].mxu1  ;;  %v2815_v18 = vrot.slane %v3174_v9, %v3962_v15 }
 0x379   :  { %v3241_v22 = vpop.f32.mrb[31].mxu1 }
 0x37a   :  { %v2343_v23 = vadd.f32 %v3239_v19, %v1929_v7  ;;  %v3242_v24 = vadd.f32 %v3241_v22, %v3240_v21  ;;  %v2800_v22 = vrot.slane %v3173_v14, %v3962_v15 }
 0x37c   :  { %v2366_v25 = vadd.f32 %v2360_v20, %v2343_v23  ;;  %v2346_v26 = vadd.f32 %v3242_v24, %v1932_v12  ;;  %v3172_v12 = vld [vmem:[%s4054_s7 + $0x2] ss:$8 sm:$0x3] }
 0x37d   :  { %v2781_v17 = vrot.slane %v3172_v12, %v3956_v13  ;;  %v2785_v19 = vrot.slane %v3172_v12, %v3962_v15 }
 0x37e   :  { %v2369_v27 = vadd.f32 %v2360_v20, %v2346_v26  ;;  %3708 = vtanh.f32 %v2366_v25  ;;  %v2796_v20 = vrot.slane %v3173_v14, %v3956_v13 }
 0x380   :  { %3710 = vtanh.f32 %v2369_v27 }
 0x388   :  { %v3709_v28 = vpop.eup %3708 }
 0x38a   :  { %v3711_v29 = vpop.eup %3710 }
 0x38b   :  { %v2378_v11 = vpack.c.bf16 %v3711_v29, %v3709_v28 }
 0x3b6   :  { %v2291_v33 = vpop.f32.mrb[24].mxu0 }
 0x3b7   :  { %v2364_v34 = vadd.f32 %v2352_v30, %v2291_v33  ;;  %v2293_v35 = vpop.f32.mrb[25].mxu0 }
 0x3b8   :  { %v2365_v36 = vadd.f32 %v2356_v31, %v2293_v35  ;;  %v2295_v50 = vpop.f32.mrb[26].mxu0 }
 0x3b9   :  { %3712 = vtanh.f32 %v2364_v34  ;;  %v2367_v37 = vadd.f32 %v2352_v30, %v2295_v50  ;;  %v2297_v38 = vpop.f32.mrb[27].mxu0 }
 0x3ba   :  { %3714 = vtanh.f32 %v2365_v36  ;;  %v2368_v39 = vadd.f32 %v2356_v31, %v2297_v38 }
 0x3bb   :  { %3716 = vtanh.f32 %v2367_v37  ;;  %v2776_v37 = vld [vmem:[%s4054_s7 + $0x5] ss:$0 sm:$0xff] }
 0x3bc   :  { %3718 = vtanh.f32 %v2368_v39 }
 0x3c3   :  { %v3713_v8 = vpop.eup %3712 }
 0x3c4   :  { %v3715_v40 = vpop.eup %3714 }
 0x3c5   :  { %v3717_v41 = vpop.eup %3716 }
 0x3c6   :  { %v3719_v42 = vpop.eup %3718  ;;  %v2376_v43 = vpack.c.bf16 %v3717_v41, %v3713_v8 }
 0x3c7   :  { %v2377_v44 = vpack.c.bf16 %v3719_v42, %v3715_v40 }
 0x3c9   :  { %2712 = vmatprep.mubr.bf16.mxu1 %v2377_v44 }
 0x3ca   :  { %2713 = vmatmul.mubr.bf16.vlgmr.msra.gmra.mrb[32].mxu1 %v2376_v43 }
 0x3cb   :  { %2724 = vmatpush1.bf16.msra.mxu1 %v3684_v46  ;;  %2755 = vmatprep.mubr.bf16.mxu1 %v3790_v0  ;;  %v3702_v0 = vld [vmem:[#allocation3 + $0x3b0] ss:$8 sps:$4 sm:$0xff]  }
 0x3cc   :  { %2725 = vmatprep.subr.bf16.mxu1 %v3689_v47 }
 0x3cf   :  { %2726 = vmatpush1.bf16.msra.mxu1 %v3687_v48 }
 0x3d0   :  { %2727 = vmatprep.subr.bf16.mxu1 %v3692_v49 }
 0x3d3   :  { %2728 = vmatpush1.bf16.msra.mxu1 %v3690_v51 }
 0x3d4   :  { %2729 = vmatprep.subr.bf16.mxu1 %v3695_v52 }
 0x3d7   :  { %2730 = vmatpush1.bf16.msra.mxu1 %v3693_v54 }
 0x3d8   :  { %2731 = vmatprep.subr.bf16.mxu1 %v3698_v56 }
 0x3db   :  { %2732 = vmatpush1.bf16.msra.mxu1 %v3696_v45 }
 0x3dc   :  { %2733 = vmatprep.subr.bf16.mxu1 %v3701_v58 }
 0x3df   :  { %2734 = vmatpush1.bf16.msra.mxu1 %v3699_v59  ;;  %v2842_v59 = vadd.s32 128, %v3976_v32 }
 0x3e0   :  { %2735 = vmatprep.subr.bf16.mxu1 %v3704_v55 }
 0x3e1   :  { %vm2844_vm9 = vcmp.eq.s32.totalorder %v2842_v59, 192  ;;  %vm2860_vm10 = vcmp.eq.s32.totalorder %v2842_v59, 193 }
 0x3e3   :  { %2736 = vmatpush1.bf16.msra.mxu1 %v3702_v0 }
 0x3e4   :  { %2737 = vmatprep.subr.bf16.mxu1 %v3707_v61 }
 0x3e7   :  { %2738 = vmatpush1.bf16.msra.mxu1 %v3705_v62 }
 0x3ea   :  { %2756 = vmatmul.mubr.bf16.vlgmr.msra.gmra.mrb[32].mxu1 %v2378_v11 }
 0x4bd   :  { %v2757_v1 = vpop.f32.mrb[32].mxu1 }
 0x4be   :  { %v3283_v2 = vadd.f32 %v2757_v1, %v2433_v57  ;;  %v2759_v53 = vpop.f32.mrb[33].mxu1 }
 0x4bf   :  { %v3284_v3 = vadd.f32 %v2759_v53, %v2437_v10  ;;  %v2761_v4 = vpop.f32.mrb[34].mxu1 }
 0x4c0   :  { %3720 = vtanh.f32 %v3283_v2  ;;  %v3285_v5 = vadd.f32 %v2761_v4, %v2433_v57  ;;  %v2763_v6 = vpop.f32.mrb[35].mxu1 }
 0x4c1   :  { %3722 = vtanh.f32 %v3284_v3  ;;  %v3286_v7 = vadd.f32 %v2763_v6, %v2437_v10 }
 0x4c2   :  { %3724 = vtanh.f32 %v3285_v5 }
 0x4c3   :  { %3726 = vtanh.f32 %v3286_v7 }
 0x4ca   :  { %v3721_v21 = vpop.eup %3720 }
 0x4cb   :  { %v3723_v23 = vpop.eup %3722  ;;  %v2818_v24 = vmul.f32 %v3721_v21, %v2811_v16  ;;  %v2788_v25 = vmul.f32 %v3721_v21, %v2781_v17 }
 0x4cc   :  { %v3725_v26 = vpop.eup %3724  ;;  %v2819_v27 = vmul.f32 %v3723_v23, %v2815_v18  ;;  %v2789_v28 = vmul.f32 %v3723_v23, %v2785_v19 }
 0x4cd   :  { %v3727_v29 = vpop.eup %3726  ;;  %v2820_v11 = vmul.f32 %v3725_v26, %v2811_v16  ;;  %v2790_v30 = vmul.f32 %v3725_v26, %v2781_v17  ;;  %v2803_v31 = vadd.f32 %v2796_v20, %v2788_v25 }
 0x4ce   :  { %v2822_v33 = vadd.f32 %v2819_v27, %v2818_v24  ;;  %v2821_v34 = vmul.f32 %v3727_v29, %v2815_v18  ;;  %v2804_v35 = vadd.f32 %v2800_v22, %v2789_v28  ;;  %v2791_v36 = vmul.f32 %v3727_v29, %v2785_v19 }
 0x4cf   :  { %v2805_v50 = vadd.f32 %v2796_v20, %v2790_v30  ;;  %2865 = vst [vmem:[%s4055_s8] sm:$0xff] %v2803_v31 }
 0x4d0   :  { %2823 = vadd.xlane.f32.xlu0 %v2822_v33  ;;  %v2825_v13 = vadd.f32 %v2821_v34, %v2820_v11  ;;  %v2806_v15 = vadd.f32 %v2800_v22, %v2791_v36 }
 0x4d1   :  { %2867 = vst [vmem:[%s4055_s8 + $0x10] sm:$0xff] %v2805_v50 }
 0x4d2   :  { %2826 = vadd.xlane.f32.xlu1 %v2825_v13 }
 0x4d4   :  { %1112 = vadd.xlane.f32.xlu0 %v3995_v60 }
 0x55d   :  { %v2824_v38 = vpop.xlane.xlu0 %2823 }
 0x55e   :  { %v2828_v39 = vadd.f32 %v2824_v38, %v2776_v37 }
 0x55f   :  { %v2827_v8 = vpop.xlane.xlu1 %2826 }
 0x560   :  { %v3175_v40 = vmul.f32 -1.442695, %v2828_v39  ;;  %v2829_v41 = vadd.f32 %v2827_v8, %v2776_v37 }
 0x561   :  { %v1113_v42 = vpop.xlane.xlu0 %1112 }
 0x562   :  { %3728 = vpow2.f32 %v3175_v40  ;;  %v3176_v43 = vmul.f32 -1.442695, %v2829_v41  ;;  %v1114_v44 = vrot.slane %v1113_v42, 4 }
 0x564   :  { %3730 = vpow2.f32 %v3176_v43  ;;  %v1115_v46 = vadd.f32 %v1114_v44, %v1113_v42 }
 0x566   :  { %v1116_v47 = vrot.slane %v1115_v46, 2 }
 0x568   :  { %v1117_v48 = vadd.f32 %v1116_v47, %v1115_v46 }
 0x56a   :  { %v1118_v49 = vrot.slane %v1117_v48, 1 }
 0x56c   :  { %v3729_v51 = vpop.eup %3728  ;;  %v1119_v60 = vadd.f32 %v1118_v49, %v1117_v48 }
 0x56d   :  { %v2836_v52 = vadd.f32 1.0, %v3729_v51 }
 0x56e   :  { %v3731_v54 = vpop.eup %3730  ;;  %3307 = vpush %v1119_v60 }
 0x56f   :  { %3732 = vrcp.f32 %v2836_v52  ;;  %v2837_v56 = vadd.f32 1.0, %v3731_v54 }
 0x571   :  { %3734 = vrcp.f32 %v2837_v56 }
 0x579   :  { %v3733_v45 = vpop.eup %3732 }
 0x57a   :  { %2847 = vperm.xlu0 %3318, %v3733_v45  }
 0x57b   :  { %v3735_v58 = vpop.eup %3734 }
 0x57c   :  { %2852 = vperm.xlu1 %3319, %v3735_v58  }
 0x59f   :  { %s3308_s7 = spop %3307 }
 0x5a0   :  { %v1121_v55 = vstv %s3308_s7 }
 0x5a1   :  { %v1122_v0 = vmul.f32 3.125e-05, %v1121_v55 }
 0x5f9   :  { %v2848_v61 = vpop.permute.xlu0 %2847 }
 0x5fa   :  { %v2856_v62 = vsel %vm2844_vm9, %v2848_v61, %v2804_v35 }
 0x5fb   :  { %v2862_v63 = vsel %vm2860_vm10, %v1122_v0, %v2856_v62  ;;  %v2853_v57 = vpop.permute.xlu1 %2852 }
 0x5fc   :  { %2866 = vst [vmem:[%s4055_s8 + $0x8] sm:$0xff] %v2862_v63  ;;  %v2858_v10 = vsel %vm2844_vm9, %v2853_v57, %v2806_v15 }
 0x5fd   :  { %v2864_v1 = vsel %vm2860_vm10, %v1122_v0, %v2858_v10 }
 0x5fe   :  { %2868 = vst [vmem:[%s4055_s8 + $0x18] sm:$0xff] %v2864_v1 }
 0x5ff   :  { %2873 = vsyncpa [#allocation4], 1 }
 0x600   :  { %2874 = vsyncpa [#allocation6], 1 }

</bundles_post_ra>
